<compile_context>
chip_gen: v7x
topology: tpu7x:2x2x1
jax: 0.10.0
libtpu: 0.0.40
codegen_flags: <defaults>
</compile_context>

<pallas_src>
import jax
import jax.numpy as jnp
from jax.experimental import pallas as pl
from jax.experimental.pallas import tpu as pltpu

DW_K = 5      # GhostConv.cv2 depthwise kernel size (fixed to 5 in the module)
DW_PAD = 2    # autopad(5) = 2
BN_EPS = 1e-5 # nn.BatchNorm2d default


def _make_kernel(C, H, W, cA, cB):
    """Builds the per-batch-element kernel. cA = c_//2 (ghost-1 inner), cB = c2//2."""
    HW = H * W
    FPAD = DW_PAD * W + DW_PAD          # flat zero-pad so row-shifts land on zeros
    L = HW + 2 * FPAD                   # padded flat length

    def kernel(x_ref, w1_ref, b1_ref, dw1_ref, db1_ref,
               w2a_ref, w2b_ref, b2_ref, dw2_ref, db2_ref,
               o_ref, pad1_ref, pad2_ref):
        # x_ref / o_ref: (C, HW)   lane-dense activations for one batch element
        # w1: (cA, C)   b1: (cA,1)   dw1: (cA, 25)  db1: (cA,1)   -> GhostConv 1 (SiLU)
        # w2a/w2b: (cB, cA) each     b2: (cB,1)     dw2: (cB,25)  db2: (cB,1) -> GhostConv 2
        # pad1/pad2: (cA, L) / (cB, L) VMEM scratch for flat zero-padded depthwise input
        x = x_ref[...]                                              # (C, HW)

        # Column masks for taps whose dx shift would wrap across image rows.
        col = jax.lax.broadcasted_iota(jnp.int32, (1, HW), 1) % W   # (1, HW)
        cmask = {0: None}
        for dx in (-2, -1, 1, 2):
            cmask[dx] = ((col + dx >= 0) & (col + dx < W)).astype(jnp.float32)

        def depthwise5x5(y, pad_ref, dw_ref):
            # y: (c, HW). pad_ref: (c, L). dw_ref: (c, 25) with tap index ky*5+kx.
            c = y.shape[0]
            zb = jnp.zeros((c, FPAD), jnp.float32)
            pad_ref[:, 0:FPAD] = zb                                  # left zero border
            pad_ref[:, FPAD + HW:L] = zb                             # right zero border
            pad_ref[:, FPAD:FPAD + HW] = y                           # interior
            ypad = pad_ref[...]                                      # (c, L)
            partials = []
            for ky in range(DW_K):                                   # one partial acc per ky
                acc = None
                for kx in range(DW_K):
                    tap = ky * DW_K + kx
                    start = ky * W + kx                              # lane offset of this tap
                    shifted = ypad[:, start:start + HW]              # (c, HW)
                    term = dw_ref[:, tap:tap + 1] * shifted          # per-channel weight
                    m = cmask[kx - DW_PAD]
                    if m is not None:
                        term = term * m                              # kill row-wrap columns
                    acc = term if acc is None else acc + term
                partials.append(acc)
            return ((partials[0] + partials[1]) +
                    (partials[2] + partials[3])) + partials[4]

        # ---- GhostConv 1 (act = SiLU):  u = silu(1x1(x)),  v = silu(dw5x5(u)) ----
        u = jnp.dot(w1_ref[...], x, preferred_element_type=jnp.float32) + b1_ref[...]
        u = u * jax.nn.sigmoid(u)                                    # SiLU, (cA, HW)
        v = depthwise5x5(u, pad1_ref, dw1_ref) + db1_ref[...]
        v = v * jax.nn.sigmoid(v)                                    # (cA, HW)
        # ghost-1 output is concat([u, v]); feed the halves straight into the next 1x1
        # (avoids materializing the concat).

        # ---- GhostConv 2 (no activation):  p = 1x1([u;v]),  q = dw5x5(p) ----
        p = (jnp.dot(w2a_ref[...], u, preferred_element_type=jnp.float32)
             + jnp.dot(w2b_ref[...], v, preferred_element_type=jnp.float32)
             + b2_ref[...])                                          # (cB, HW)
        q = depthwise5x5(p, pad2_ref, dw2_ref) + db2_ref[...]        # (cB, HW)

        # ---- residual add (identity shortcut); output = concat([p, q]) + x ----
        o_ref[0:cB, :] = (p + x[0:cB, :]).astype(o_ref.dtype)
        o_ref[cB:C, :] = (q + x[cB:C, :]).astype(o_ref.dtype)

    return kernel, L


def _fold_bn(w, bn):
    """Fold inference BatchNorm into a bias-free conv: returns fused (weight, bias)."""
    gamma, beta, mean, var = bn
    scale = gamma / jnp.sqrt(var + BN_EPS)
    return w * scale.reshape(-1, 1, 1, 1), beta - mean * scale


@jax.jit
def ghost_bottleneck_forward(x, params):
    """x: (B, C, H, W) with c1 == c2 == C (required by the s==1 identity shortcut)."""
    B, C, H, W = x.shape
    HW = H * W
    cB = C // 2
    cA = cB // 2

    w1, b1 = _fold_bn(params["g1_w1"], params["g1_bn1"])     # (cA, C, 1, 1)
    dw1, db1 = _fold_bn(params["g1_w2"], params["g1_bn2"])   # (cA, 1, 5, 5)
    w2, b2 = _fold_bn(params["g2_w1"], params["g2_bn1"])     # (cB, 2*cA, 1, 1)
    dw2, db2 = _fold_bn(params["g2_w2"], params["g2_bn2"])   # (cB, 1, 5, 5)

    w1 = w1.reshape(cA, C).astype(jnp.float32)
    b1 = b1.reshape(cA, 1).astype(jnp.float32)
    dw1 = dw1.reshape(cA, DW_K * DW_K).astype(jnp.float32)
    db1 = db1.reshape(cA, 1).astype(jnp.float32)
    w2 = w2.reshape(cB, 2 * cA).astype(jnp.float32)
    w2a, w2b = w2[:, :cA], w2[:, cA:]                         # split for the two ghost halves
    b2 = b2.reshape(cB, 1).astype(jnp.float32)
    dw2 = dw2.reshape(cB, DW_K * DW_K).astype(jnp.float32)
    db2 = db2.reshape(cB, 1).astype(jnp.float32)

    kernel, L = _make_kernel(C, H, W, cA, cB)
    x_flat = x.reshape(B, C, HW).astype(jnp.float32)          # free (layout-preserving) reshape

    def const_spec(shape):
        return pl.BlockSpec(shape, lambda b: (0,) * len(shape))

    out_flat = pl.pallas_call(
        kernel,
        out_shape=jax.ShapeDtypeStruct((B, C, HW), jnp.float32),
        grid=(B,),
        in_specs=[
            pl.BlockSpec((None, C, HW), lambda b: (b, 0, 0)),        # x, one batch element
            const_spec((cA, C)), const_spec((cA, 1)),
            const_spec((cA, DW_K * DW_K)), const_spec((cA, 1)),
            const_spec((cB, cA)), const_spec((cB, cA)), const_spec((cB, 1)),
            const_spec((cB, DW_K * DW_K)), const_spec((cB, 1)),
        ],
        out_specs=pl.BlockSpec((None, C, HW), lambda b: (b, 0, 0)),
        scratch_shapes=[
            pltpu.VMEM((cA, L), jnp.float32),                        # padded buffer, ghost-1 DW
            pltpu.VMEM((cB, L), jnp.float32),                        # padded buffer, ghost-2 DW
        ],
        compiler_params=pltpu.CompilerParams(dimension_semantics=("parallel",)),
    )(x_flat, w1, b1, dw1, db1, w2a, w2b, b2, dw2, db2)

    return out_flat.reshape(B, C, H, W)


# ------------------------- pure-JAX reference (un-fused) -------------------------

def _conv_bn_ref(x, w, bn, groups, pad, act):
    gamma, beta, mean, var = bn
    y = jax.lax.conv_general_dilated(
        x, w, window_strides=(1, 1), padding=[(pad, pad), (pad, pad)],
        dimension_numbers=("NCHW", "OIHW", "NCHW"),
        feature_group_count=groups, precision=jax.lax.Precision.HIGHEST)
    scale = gamma / jnp.sqrt(var + BN_EPS)
    y = y * scale.reshape(1, -1, 1, 1) + (beta - mean * scale).reshape(1, -1, 1, 1)
    if act:
        y = y * jax.nn.sigmoid(y)                                    # SiLU
    return y


@jax.jit
def ghost_bottleneck_reference(x, params):
    C = x.shape[1]
    cB = C // 2
    cA = cB // 2
    # GhostConv(c1, c2//2, 1, 1)  (SiLU)
    y1 = _conv_bn_ref(x, params["g1_w1"], params["g1_bn1"], groups=1, pad=0, act=True)
    y2 = _conv_bn_ref(y1, params["g1_w2"], params["g1_bn2"], groups=cA, pad=DW_PAD, act=True)
    ya = jnp.concatenate([y1, y2], axis=1)
    # GhostConv(c2//2, c2, 1, 1, act=False)
    z1 = _conv_bn_ref(ya, params["g2_w1"], params["g2_bn1"], groups=1, pad=0, act=False)
    z2 = _conv_bn_ref(z1, params["g2_w2"], params["g2_bn2"], groups=cB, pad=DW_PAD, act=False)
    zb = jnp.concatenate([z1, z2], axis=1)
    return zb + x                                                    # s == 1: identity shortcut


if __name__ == "__main__":
    B, C, H, W = 2, 8, 16, 16          # c1 == c2 == 8 so the identity shortcut is valid
    cB = C // 2                         # 4
    cA = cB // 2                        # 2

    key = jax.random.PRNGKey(0)
    ks = jax.random.split(key, 9)

    def bn_params(k, c):
        k1, k2, k3, k4 = jax.random.split(k, 4)
        gamma = 1.0 + 0.1 * jax.random.normal(k1, (c,), jnp.float32)
        beta = 0.1 * jax.random.normal(k2, (c,), jnp.float32)
        mean = 0.1 * jax.random.normal(k3, (c,), jnp.float32)
        var = 1.0 + 0.1 * jax.random.uniform(k4, (c,), jnp.float32)
        return (gamma, beta, mean, var)

    x = jax.random.normal(ks[0], (B, C, H, W), dtype=jnp.float32)
    params = {
        "g1_w1": 0.3 * jax.random.normal(ks[1], (cA, C, 1, 1), jnp.float32),      # Conv2d(C, cA, 1)
        "g1_bn1": bn_params(ks[2], cA),
        "g1_w2": 0.2 * jax.random.normal(ks[3], (cA, 1, DW_K, DW_K), jnp.float32),  # DW Conv2d(cA, cA, 5)
        "g1_bn2": bn_params(ks[4], cA),
        "g2_w1": 0.3 * jax.random.normal(ks[5], (cB, 2 * cA, 1, 1), jnp.float32),  # Conv2d(2cA, cB, 1)
        "g2_bn1": bn_params(ks[6], cB),
        "g2_w2": 0.2 * jax.random.normal(ks[7], (cB, 1, DW_K, DW_K), jnp.float32),  # DW Conv2d(cB, cB, 5)
        "g2_bn2": bn_params(ks[8], cB),
    }

    out = jax.block_until_ready(ghost_bottleneck_forward(x, params))
    ref = jax.block_until_ready(ghost_bottleneck_reference(x, params))

    assert out.shape == (B, C, H, W)
    err = float(jnp.max(jnp.abs(out - ref)))
    assert jnp.allclose(out, ref, atol=1e-3, rtol=1e-3), f"max abs err {err}"
    print("KERNEL_OK")
</pallas_src>

<mosaic_0001>
module attributes {stable_mosaic.version = 11 : i64} {
  func.func @kernel(%arg0: i32, %arg1: memref<1x8x256xf32, #tpu.memory_space<vmem>>, %arg2: memref<2x8xf32, #tpu.memory_space<vmem>>, %arg3: memref<2x1xf32, #tpu.memory_space<vmem>>, %arg4: memref<2x25xf32, #tpu.memory_space<vmem>>, %arg5: memref<2x1xf32, #tpu.memory_space<vmem>>, %arg6: memref<4x2xf32, #tpu.memory_space<vmem>>, %arg7: memref<4x2xf32, #tpu.memory_space<vmem>>, %arg8: memref<4x1xf32, #tpu.memory_space<vmem>>, %arg9: memref<4x25xf32, #tpu.memory_space<vmem>>, %arg10: memref<4x1xf32, #tpu.memory_space<vmem>>, %arg11: memref<1x8x256xf32, #tpu.memory_space<vmem>>, %arg12: memref<2x324xf32, #tpu.memory_space<vmem>>, %arg13: memref<4x324xf32, #tpu.memory_space<vmem>>) attributes {dimension_semantics = [#tpu.dimension_semantics<parallel>], iteration_bounds = array<i64: 2>, scalar_prefetch = 0 : i64, scratch_operands = 2 : i64, tpu.core_type = #tpu.core_type<tc>, window_params = [{transform_indices = @transform_0, window_bounds = array<i64: 1, 8, 256>}, {pipeline_mode = #tpu.pipeline_mode<synchronous>, transform_indices = @transform_1, window_bounds = array<i64: 2, 8>}, {pipeline_mode = #tpu.pipeline_mode<synchronous>, transform_indices = @transform_2, window_bounds = array<i64: 2, 1>}, {pipeline_mode = #tpu.pipeline_mode<synchronous>, transform_indices = @transform_3, window_bounds = array<i64: 2, 25>}, {pipeline_mode = #tpu.pipeline_mode<synchronous>, transform_indices = @transform_4, window_bounds = array<i64: 2, 1>}, {pipeline_mode = #tpu.pipeline_mode<synchronous>, transform_indices = @transform_5, window_bounds = array<i64: 4, 2>}, {pipeline_mode = #tpu.pipeline_mode<synchronous>, transform_indices = @transform_6, window_bounds = array<i64: 4, 2>}, {pipeline_mode = #tpu.pipeline_mode<synchronous>, transform_indices = @transform_7, window_bounds = array<i64: 4, 1>}, {pipeline_mode = #tpu.pipeline_mode<synchronous>, transform_indices = @transform_8, window_bounds = array<i64: 4, 25>}, {pipeline_mode = #tpu.pipeline_mode<synchronous>, transform_indices = @transform_9, window_bounds = array<i64: 4, 1>}, {transform_indices = @transform_10, window_bounds = array<i64: 1, 8, 256>}]} {
    %c0 = arith.constant 0 : index
    %c0_0 = arith.constant 0 : index
    %c0_1 = arith.constant 0 : index
    %0 = vector.load %arg1[%c0, %c0_0, %c0_1] : memref<1x8x256xf32, #tpu.memory_space<vmem>>, vector<1x8x256xf32>
    %1 = vector.shape_cast %0 : vector<1x8x256xf32> to vector<8x256xf32>
    %2 = tpu.iota {dimensions = array<i32: 1>} : vector<1x256xi32>
    %c16_i32 = arith.constant 16 : i32
    %c0_i32 = arith.constant 0 : i32
    %3 = arith.cmpi eq, %c16_i32, %c0_i32 : i32
    %c1_i32 = arith.constant 1 : i32
    %4 = arith.select %3, %c1_i32, %c16_i32 : i32
    %5 = vector.broadcast %4 : i32 to vector<1x256xi32>
    %6 = arith.remsi %2, %5 : vector<1x256xi32>
    %c0_i32_2 = arith.constant 0 : i32
    %7 = vector.broadcast %c0_i32_2 : i32 to vector<1x256xi32>
    %8 = arith.cmpi ne, %6, %7 : vector<1x256xi32>
    %c0_i32_3 = arith.constant 0 : i32
    %9 = vector.broadcast %c0_i32_3 : i32 to vector<1x256xi32>
    %10 = arith.cmpi slt, %6, %9 : vector<1x256xi32>
    %c0_i32_4 = arith.constant 0 : i32
    %11 = arith.cmpi slt, %4, %c0_i32_4 : i32
    %12 = vector.broadcast %11 : i1 to vector<1x256xi1>
    %13 = vector.broadcast %12 : vector<1x256xi1> to vector<1x256xi1>
    %14 = arith.xori %10, %13 : vector<1x256xi1>
    %15 = arith.andi %14, %8 : vector<1x256xi1>
    %16 = vector.broadcast %4 : i32 to vector<1x256xi32>
    %17 = arith.addi %6, %16 : vector<1x256xi32>
    %18 = arith.select %15, %17, %6 : vector<1x256xi1>, vector<1x256xi32>
    %c-2_i32 = arith.constant -2 : i32
    %19 = vector.broadcast %c-2_i32 : i32 to vector<1x256xi32>
    %20 = arith.addi %18, %19 : vector<1x256xi32>
    %c0_i32_5 = arith.constant 0 : i32
    %21 = vector.broadcast %c0_i32_5 : i32 to vector<1x256xi32>
    %22 = arith.cmpi sge, %20, %21 : vector<1x256xi32>
    %c-2_i32_6 = arith.constant -2 : i32
    %23 = vector.broadcast %c-2_i32_6 : i32 to vector<1x256xi32>
    %24 = arith.addi %18, %23 : vector<1x256xi32>
    %c16_i32_7 = arith.constant 16 : i32
    %25 = vector.broadcast %c16_i32_7 : i32 to vector<1x256xi32>
    %26 = arith.cmpi slt, %24, %25 : vector<1x256xi32>
    %27 = arith.andi %22, %26 : vector<1x256xi1>
    %28 = arith.extui %27 : vector<1x256xi1> to vector<1x256xi32>
    %29 = arith.sitofp %28 : vector<1x256xi32> to vector<1x256xf32>
    %c-1_i32 = arith.constant -1 : i32
    %30 = vector.broadcast %c-1_i32 : i32 to vector<1x256xi32>
    %31 = arith.addi %18, %30 : vector<1x256xi32>
    %c0_i32_8 = arith.constant 0 : i32
    %32 = vector.broadcast %c0_i32_8 : i32 to vector<1x256xi32>
    %33 = arith.cmpi sge, %31, %32 : vector<1x256xi32>
    %c-1_i32_9 = arith.constant -1 : i32
    %34 = vector.broadcast %c-1_i32_9 : i32 to vector<1x256xi32>
    %35 = arith.addi %18, %34 : vector<1x256xi32>
    %c16_i32_10 = arith.constant 16 : i32
    %36 = vector.broadcast %c16_i32_10 : i32 to vector<1x256xi32>
    %37 = arith.cmpi slt, %35, %36 : vector<1x256xi32>
    %38 = arith.andi %33, %37 : vector<1x256xi1>
    %39 = arith.extui %38 : vector<1x256xi1> to vector<1x256xi32>
    %40 = arith.sitofp %39 : vector<1x256xi32> to vector<1x256xf32>
    %c1_i32_11 = arith.constant 1 : i32
    %41 = vector.broadcast %c1_i32_11 : i32 to vector<1x256xi32>
    %42 = arith.addi %18, %41 : vector<1x256xi32>
    %c0_i32_12 = arith.constant 0 : i32
    %43 = vector.broadcast %c0_i32_12 : i32 to vector<1x256xi32>
    %44 = arith.cmpi sge, %42, %43 : vector<1x256xi32>
    %c1_i32_13 = arith.constant 1 : i32
    %45 = vector.broadcast %c1_i32_13 : i32 to vector<1x256xi32>
    %46 = arith.addi %18, %45 : vector<1x256xi32>
    %c16_i32_14 = arith.constant 16 : i32
    %47 = vector.broadcast %c16_i32_14 : i32 to vector<1x256xi32>
    %48 = arith.cmpi slt, %46, %47 : vector<1x256xi32>
    %49 = arith.andi %44, %48 : vector<1x256xi1>
    %50 = arith.extui %49 : vector<1x256xi1> to vector<1x256xi32>
    %51 = arith.sitofp %50 : vector<1x256xi32> to vector<1x256xf32>
    %c2_i32 = arith.constant 2 : i32
    %52 = vector.broadcast %c2_i32 : i32 to vector<1x256xi32>
    %53 = arith.addi %18, %52 : vector<1x256xi32>
    %c0_i32_15 = arith.constant 0 : i32
    %54 = vector.broadcast %c0_i32_15 : i32 to vector<1x256xi32>
    %55 = arith.cmpi sge, %53, %54 : vector<1x256xi32>
    %c2_i32_16 = arith.constant 2 : i32
    %56 = vector.broadcast %c2_i32_16 : i32 to vector<1x256xi32>
    %57 = arith.addi %18, %56 : vector<1x256xi32>
    %c16_i32_17 = arith.constant 16 : i32
    %58 = vector.broadcast %c16_i32_17 : i32 to vector<1x256xi32>
    %59 = arith.cmpi slt, %57, %58 : vector<1x256xi32>
    %60 = arith.andi %55, %59 : vector<1x256xi1>
    %61 = arith.extui %60 : vector<1x256xi1> to vector<1x256xi32>
    %62 = arith.sitofp %61 : vector<1x256xi32> to vector<1x256xf32>
    %c0_18 = arith.constant 0 : index
    %c0_19 = arith.constant 0 : index
    %63 = vector.load %arg2[%c0_18, %c0_19] : memref<2x8xf32, #tpu.memory_space<vmem>>, vector<2x8xf32>
    %cst = arith.constant dense<0.000000e+00> : vector<2x256xf32>
    %64 = tpu.matmul %63, %1, %cst {dimension_numbers = #tpu.dot_dimension_numbers<[1], [0], [0], [1], [0, 0, 1, 1], [], []>} : vector<2x8xf32>, vector<8x256xf32>, vector<2x256xf32> -> vector<2x256xf32>
    %c0_20 = arith.constant 0 : index
    %c0_21 = arith.constant 0 : index
    %65 = vector.load %arg3[%c0_20, %c0_21] : memref<2x1xf32, #tpu.memory_space<vmem>>, vector<2x1xf32>
    %66 = vector.broadcast %65 : vector<2x1xf32> to vector<2x256xf32>
    %67 = arith.addf %64, %66 : vector<2x256xf32>
    %68 = arith.negf %67 : vector<2x256xf32>
    %69 = math.exp %68 : vector<2x256xf32>
    %cst_22 = arith.constant 1.000000e+00 : f32
    %70 = vector.broadcast %cst_22 : f32 to vector<2x256xf32>
    %71 = arith.addf %70, %69 : vector<2x256xf32>
    %72 = arith.divf %70, %71 : vector<2x256xf32>
    %73 = arith.mulf %67, %72 : vector<2x256xf32>
    %cst_23 = arith.constant 0.000000e+00 : f32
    %74 = vector.broadcast %cst_23 : f32 to vector<2x34xf32>
    %c0_24 = arith.constant 0 : index
    %c0_25 = arith.constant 0 : index
    %75 = vector.load %arg12[%c0_24, %c0_25] : memref<2x324xf32, #tpu.memory_space<vmem>>, vector<2x34xf32>
    tpu.vector_store %arg12[%c0_24, %c0_25], %74 {strides = array<i32>} : memref<2x324xf32, #tpu.memory_space<vmem>>, vector<2x34xf32>,
    %c0_26 = arith.constant 0 : index
    %c290 = arith.constant 290 : index
    %76 = vector.load %arg12[%c0_26, %c290] : memref<2x324xf32, #tpu.memory_space<vmem>>, vector<2x34xf32>
    tpu.vector_store %arg12[%c0_26, %c290], %74 {strides = array<i32>} : memref<2x324xf32, #tpu.memory_space<vmem>>, vector<2x34xf32>,
    %c0_27 = arith.constant 0 : index
    %c34 = arith.constant 34 : index
    %77 = vector.load %arg12[%c0_27, %c34] : memref<2x324xf32, #tpu.memory_space<vmem>>, vector<2x256xf32>
    tpu.vector_store %arg12[%c0_27, %c34], %73 {strides = array<i32>} : memref<2x324xf32, #tpu.memory_space<vmem>>, vector<2x256xf32>,
    %c0_28 = arith.constant 0 : index
    %c0_29 = arith.constant 0 : index
    %78 = vector.load %arg12[%c0_28, %c0_29] : memref<2x324xf32, #tpu.memory_space<vmem>>, vector<2x324xf32>
    %79 = vector.extract_strided_slice %78 {offsets = [0, 0], sizes = [2, 256], strides = [1, 1]} : vector<2x324xf32> to vector<2x256xf32>
    %c0_30 = arith.constant 0 : index
    %c0_31 = arith.constant 0 : index
    %80 = vector.load %arg4[%c0_30, %c0_31] : memref<2x25xf32, #tpu.memory_space<vmem>>, vector<2x1xf32>
    %81 = vector.broadcast %80 : vector<2x1xf32> to vector<2x256xf32>
    %82 = arith.mulf %81, %79 : vector<2x256xf32>
    %83 = vector.broadcast %29 : vector<1x256xf32> to vector<2x256xf32>
    %84 = arith.mulf %82, %83 : vector<2x256xf32>
    %85 = vector.extract_strided_slice %78 {offsets = [0, 1], sizes = [2, 256], strides = [1, 1]} : vector<2x324xf32> to vector<2x256xf32>
    %c0_32 = arith.constant 0 : index
    %c1 = arith.constant 1 : index
    %86 = vector.load %arg4[%c0_32, %c1] : memref<2x25xf32, #tpu.memory_space<vmem>>, vector<2x1xf32>
    %87 = vector.broadcast %86 : vector<2x1xf32> to vector<2x256xf32>
    %88 = arith.mulf %87, %85 : vector<2x256xf32>
    %89 = vector.broadcast %40 : vector<1x256xf32> to vector<2x256xf32>
    %90 = arith.mulf %88, %89 : vector<2x256xf32>
    %91 = arith.addf %84, %90 : vector<2x256xf32>
    %92 = vector.extract_strided_slice %78 {offsets = [0, 2], sizes = [2, 256], strides = [1, 1]} : vector<2x324xf32> to vector<2x256xf32>
    %c0_33 = arith.constant 0 : index
    %c2 = arith.constant 2 : index
    %93 = vector.load %arg4[%c0_33, %c2] : memref<2x25xf32, #tpu.memory_space<vmem>>, vector<2x1xf32>
    %94 = vector.broadcast %93 : vector<2x1xf32> to vector<2x256xf32>
    %95 = arith.mulf %94, %92 : vector<2x256xf32>
    %96 = arith.addf %91, %95 : vector<2x256xf32>
    %97 = vector.extract_strided_slice %78 {offsets = [0, 3], sizes = [2, 256], strides = [1, 1]} : vector<2x324xf32> to vector<2x256xf32>
    %c0_34 = arith.constant 0 : index
    %c3 = arith.constant 3 : index
    %98 = vector.load %arg4[%c0_34, %c3] : memref<2x25xf32, #tpu.memory_space<vmem>>, vector<2x1xf32>
    %99 = vector.broadcast %98 : vector<2x1xf32> to vector<2x256xf32>
    %100 = arith.mulf %99, %97 : vector<2x256xf32>
    %101 = vector.broadcast %51 : vector<1x256xf32> to vector<2x256xf32>
    %102 = arith.mulf %100, %101 : vector<2x256xf32>
    %103 = arith.addf %96, %102 : vector<2x256xf32>
    %104 = vector.extract_strided_slice %78 {offsets = [0, 4], sizes = [2, 256], strides = [1, 1]} : vector<2x324xf32> to vector<2x256xf32>
    %c0_35 = arith.constant 0 : index
    %c4 = arith.constant 4 : index
    %105 = vector.load %arg4[%c0_35, %c4] : memref<2x25xf32, #tpu.memory_space<vmem>>, vector<2x1xf32>
    %106 = vector.broadcast %105 : vector<2x1xf32> to vector<2x256xf32>
    %107 = arith.mulf %106, %104 : vector<2x256xf32>
    %108 = vector.broadcast %62 : vector<1x256xf32> to vector<2x256xf32>
    %109 = arith.mulf %107, %108 : vector<2x256xf32>
    %110 = arith.addf %103, %109 : vector<2x256xf32>
    %111 = vector.extract_strided_slice %78 {offsets = [0, 16], sizes = [2, 256], strides = [1, 1]} : vector<2x324xf32> to vector<2x256xf32>
    %c0_36 = arith.constant 0 : index
    %c5 = arith.constant 5 : index
    %112 = vector.load %arg4[%c0_36, %c5] : memref<2x25xf32, #tpu.memory_space<vmem>>, vector<2x1xf32>
    %113 = vector.broadcast %112 : vector<2x1xf32> to vector<2x256xf32>
    %114 = arith.mulf %113, %111 : vector<2x256xf32>
    %115 = vector.broadcast %29 : vector<1x256xf32> to vector<2x256xf32>
    %116 = arith.mulf %114, %115 : vector<2x256xf32>
    %117 = vector.extract_strided_slice %78 {offsets = [0, 17], sizes = [2, 256], strides = [1, 1]} : vector<2x324xf32> to vector<2x256xf32>
    %c0_37 = arith.constant 0 : index
    %c6 = arith.constant 6 : index
    %118 = vector.load %arg4[%c0_37, %c6] : memref<2x25xf32, #tpu.memory_space<vmem>>, vector<2x1xf32>
    %119 = vector.broadcast %118 : vector<2x1xf32> to vector<2x256xf32>
    %120 = arith.mulf %119, %117 : vector<2x256xf32>
    %121 = vector.broadcast %40 : vector<1x256xf32> to vector<2x256xf32>
    %122 = arith.mulf %120, %121 : vector<2x256xf32>
    %123 = arith.addf %116, %122 : vector<2x256xf32>
    %124 = vector.extract_strided_slice %78 {offsets = [0, 18], sizes = [2, 256], strides = [1, 1]} : vector<2x324xf32> to vector<2x256xf32>
    %c0_38 = arith.constant 0 : index
    %c7 = arith.constant 7 : index
    %125 = vector.load %arg4[%c0_38, %c7] : memref<2x25xf32, #tpu.memory_space<vmem>>, vector<2x1xf32>
    %126 = vector.broadcast %125 : vector<2x1xf32> to vector<2x256xf32>
    %127 = arith.mulf %126, %124 : vector<2x256xf32>
    %128 = arith.addf %123, %127 : vector<2x256xf32>
    %129 = vector.extract_strided_slice %78 {offsets = [0, 19], sizes = [2, 256], strides = [1, 1]} : vector<2x324xf32> to vector<2x256xf32>
    %c0_39 = arith.constant 0 : index
    %c8 = arith.constant 8 : index
    %130 = vector.load %arg4[%c0_39, %c8] : memref<2x25xf32, #tpu.memory_space<vmem>>, vector<2x1xf32>
    %131 = vector.broadcast %130 : vector<2x1xf32> to vector<2x256xf32>
    %132 = arith.mulf %131, %129 : vector<2x256xf32>
    %133 = vector.broadcast %51 : vector<1x256xf32> to vector<2x256xf32>
    %134 = arith.mulf %132, %133 : vector<2x256xf32>
    %135 = arith.addf %128, %134 : vector<2x256xf32>
    %136 = vector.extract_strided_slice %78 {offsets = [0, 20], sizes = [2, 256], strides = [1, 1]} : vector<2x324xf32> to vector<2x256xf32>
    %c0_40 = arith.constant 0 : index
    %c9 = arith.constant 9 : index
    %137 = vector.load %arg4[%c0_40, %c9] : memref<2x25xf32, #tpu.memory_space<vmem>>, vector<2x1xf32>
    %138 = vector.broadcast %137 : vector<2x1xf32> to vector<2x256xf32>
    %139 = arith.mulf %138, %136 : vector<2x256xf32>
    %140 = vector.broadcast %62 : vector<1x256xf32> to vector<2x256xf32>
    %141 = arith.mulf %139, %140 : vector<2x256xf32>
    %142 = arith.addf %135, %141 : vector<2x256xf32>
    %143 = vector.extract_strided_slice %78 {offsets = [0, 32], sizes = [2, 256], strides = [1, 1]} : vector<2x324xf32> to vector<2x256xf32>
    %c0_41 = arith.constant 0 : index
    %c10 = arith.constant 10 : index
    %144 = vector.load %arg4[%c0_41, %c10] : memref<2x25xf32, #tpu.memory_space<vmem>>, vector<2x1xf32>
    %145 = vector.broadcast %144 : vector<2x1xf32> to vector<2x256xf32>
    %146 = arith.mulf %145, %143 : vector<2x256xf32>
    %147 = vector.broadcast %29 : vector<1x256xf32> to vector<2x256xf32>
    %148 = arith.mulf %146, %147 : vector<2x256xf32>
    %149 = vector.extract_strided_slice %78 {offsets = [0, 33], sizes = [2, 256], strides = [1, 1]} : vector<2x324xf32> to vector<2x256xf32>
    %c0_42 = arith.constant 0 : index
    %c11 = arith.constant 11 : index
    %150 = vector.load %arg4[%c0_42, %c11] : memref<2x25xf32, #tpu.memory_space<vmem>>, vector<2x1xf32>
    %151 = vector.broadcast %150 : vector<2x1xf32> to vector<2x256xf32>
    %152 = arith.mulf %151, %149 : vector<2x256xf32>
    %153 = vector.broadcast %40 : vector<1x256xf32> to vector<2x256xf32>
    %154 = arith.mulf %152, %153 : vector<2x256xf32>
    %155 = arith.addf %148, %154 : vector<2x256xf32>
    %156 = vector.extract_strided_slice %78 {offsets = [0, 34], sizes = [2, 256], strides = [1, 1]} : vector<2x324xf32> to vector<2x256xf32>
    %c0_43 = arith.constant 0 : index
    %c12 = arith.constant 12 : index
    %157 = vector.load %arg4[%c0_43, %c12] : memref<2x25xf32, #tpu.memory_space<vmem>>, vector<2x1xf32>
    %158 = vector.broadcast %157 : vector<2x1xf32> to vector<2x256xf32>
    %159 = arith.mulf %158, %156 : vector<2x256xf32>
    %160 = arith.addf %155, %159 : vector<2x256xf32>
    %161 = vector.extract_strided_slice %78 {offsets = [0, 35], sizes = [2, 256], strides = [1, 1]} : vector<2x324xf32> to vector<2x256xf32>
    %c0_44 = arith.constant 0 : index
    %c13 = arith.constant 13 : index
    %162 = vector.load %arg4[%c0_44, %c13] : memref<2x25xf32, #tpu.memory_space<vmem>>, vector<2x1xf32>
    %163 = vector.broadcast %162 : vector<2x1xf32> to vector<2x256xf32>
    %164 = arith.mulf %163, %161 : vector<2x256xf32>
    %165 = vector.broadcast %51 : vector<1x256xf32> to vector<2x256xf32>
    %166 = arith.mulf %164, %165 : vector<2x256xf32>
    %167 = arith.addf %160, %166 : vector<2x256xf32>
    %168 = vector.extract_strided_slice %78 {offsets = [0, 36], sizes = [2, 256], strides = [1, 1]} : vector<2x324xf32> to vector<2x256xf32>
    %c0_45 = arith.constant 0 : index
    %c14 = arith.constant 14 : index
    %169 = vector.load %arg4[%c0_45, %c14] : memref<2x25xf32, #tpu.memory_space<vmem>>, vector<2x1xf32>
    %170 = vector.broadcast %169 : vector<2x1xf32> to vector<2x256xf32>
    %171 = arith.mulf %170, %168 : vector<2x256xf32>
    %172 = vector.broadcast %62 : vector<1x256xf32> to vector<2x256xf32>
    %173 = arith.mulf %171, %172 : vector<2x256xf32>
    %174 = arith.addf %167, %173 : vector<2x256xf32>
    %175 = vector.extract_strided_slice %78 {offsets = [0, 48], sizes = [2, 256], strides = [1, 1]} : vector<2x324xf32> to vector<2x256xf32>
    %c0_46 = arith.constant 0 : index
    %c15 = arith.constant 15 : index
    %176 = vector.load %arg4[%c0_46, %c15] : memref<2x25xf32, #tpu.memory_space<vmem>>, vector<2x1xf32>
    %177 = vector.broadcast %176 : vector<2x1xf32> to vector<2x256xf32>
    %178 = arith.mulf %177, %175 : vector<2x256xf32>
    %179 = vector.broadcast %29 : vector<1x256xf32> to vector<2x256xf32>
    %180 = arith.mulf %178, %179 : vector<2x256xf32>
    %181 = vector.extract_strided_slice %78 {offsets = [0, 49], sizes = [2, 256], strides = [1, 1]} : vector<2x324xf32> to vector<2x256xf32>
    %c0_47 = arith.constant 0 : index
    %c16 = arith.constant 16 : index
    %182 = vector.load %arg4[%c0_47, %c16] : memref<2x25xf32, #tpu.memory_space<vmem>>, vector<2x1xf32>
    %183 = vector.broadcast %182 : vector<2x1xf32> to vector<2x256xf32>
    %184 = arith.mulf %183, %181 : vector<2x256xf32>
    %185 = vector.broadcast %40 : vector<1x256xf32> to vector<2x256xf32>
    %186 = arith.mulf %184, %185 : vector<2x256xf32>
    %187 = arith.addf %180, %186 : vector<2x256xf32>
    %188 = vector.extract_strided_slice %78 {offsets = [0, 50], sizes = [2, 256], strides = [1, 1]} : vector<2x324xf32> to vector<2x256xf32>
    %c0_48 = arith.constant 0 : index
    %c17 = arith.constant 17 : index
    %189 = vector.load %arg4[%c0_48, %c17] : memref<2x25xf32, #tpu.memory_space<vmem>>, vector<2x1xf32>
    %190 = vector.broadcast %189 : vector<2x1xf32> to vector<2x256xf32>
    %191 = arith.mulf %190, %188 : vector<2x256xf32>
    %192 = arith.addf %187, %191 : vector<2x256xf32>
    %193 = vector.extract_strided_slice %78 {offsets = [0, 51], sizes = [2, 256], strides = [1, 1]} : vector<2x324xf32> to vector<2x256xf32>
    %c0_49 = arith.constant 0 : index
    %c18 = arith.constant 18 : index
    %194 = vector.load %arg4[%c0_49, %c18] : memref<2x25xf32, #tpu.memory_space<vmem>>, vector<2x1xf32>
    %195 = vector.broadcast %194 : vector<2x1xf32> to vector<2x256xf32>
    %196 = arith.mulf %195, %193 : vector<2x256xf32>
    %197 = vector.broadcast %51 : vector<1x256xf32> to vector<2x256xf32>
    %198 = arith.mulf %196, %197 : vector<2x256xf32>
    %199 = arith.addf %192, %198 : vector<2x256xf32>
    %200 = vector.extract_strided_slice %78 {offsets = [0, 52], sizes = [2, 256], strides = [1, 1]} : vector<2x324xf32> to vector<2x256xf32>
    %c0_50 = arith.constant 0 : index
    %c19 = arith.constant 19 : index
    %201 = vector.load %arg4[%c0_50, %c19] : memref<2x25xf32, #tpu.memory_space<vmem>>, vector<2x1xf32>
    %202 = vector.broadcast %201 : vector<2x1xf32> to vector<2x256xf32>
    %203 = arith.mulf %202, %200 : vector<2x256xf32>
    %204 = vector.broadcast %62 : vector<1x256xf32> to vector<2x256xf32>
    %205 = arith.mulf %203, %204 : vector<2x256xf32>
    %206 = arith.addf %199, %205 : vector<2x256xf32>
    %207 = vector.extract_strided_slice %78 {offsets = [0, 64], sizes = [2, 256], strides = [1, 1]} : vector<2x324xf32> to vector<2x256xf32>
    %c0_51 = arith.constant 0 : index
    %c20 = arith.constant 20 : index
    %208 = vector.load %arg4[%c0_51, %c20] : memref<2x25xf32, #tpu.memory_space<vmem>>, vector<2x1xf32>
    %209 = vector.broadcast %208 : vector<2x1xf32> to vector<2x256xf32>
    %210 = arith.mulf %209, %207 : vector<2x256xf32>
    %211 = vector.broadcast %29 : vector<1x256xf32> to vector<2x256xf32>
    %212 = arith.mulf %210, %211 : vector<2x256xf32>
    %213 = vector.extract_strided_slice %78 {offsets = [0, 65], sizes = [2, 256], strides = [1, 1]} : vector<2x324xf32> to vector<2x256xf32>
    %c0_52 = arith.constant 0 : index
    %c21 = arith.constant 21 : index
    %214 = vector.load %arg4[%c0_52, %c21] : memref<2x25xf32, #tpu.memory_space<vmem>>, vector<2x1xf32>
    %215 = vector.broadcast %214 : vector<2x1xf32> to vector<2x256xf32>
    %216 = arith.mulf %215, %213 : vector<2x256xf32>
    %217 = vector.broadcast %40 : vector<1x256xf32> to vector<2x256xf32>
    %218 = arith.mulf %216, %217 : vector<2x256xf32>
    %219 = arith.addf %212, %218 : vector<2x256xf32>
    %220 = vector.extract_strided_slice %78 {offsets = [0, 66], sizes = [2, 256], strides = [1, 1]} : vector<2x324xf32> to vector<2x256xf32>
    %c0_53 = arith.constant 0 : index
    %c22 = arith.constant 22 : index
    %221 = vector.load %arg4[%c0_53, %c22] : memref<2x25xf32, #tpu.memory_space<vmem>>, vector<2x1xf32>
    %222 = vector.broadcast %221 : vector<2x1xf32> to vector<2x256xf32>
    %223 = arith.mulf %222, %220 : vector<2x256xf32>
    %224 = arith.addf %219, %223 : vector<2x256xf32>
    %225 = vector.extract_strided_slice %78 {offsets = [0, 67], sizes = [2, 256], strides = [1, 1]} : vector<2x324xf32> to vector<2x256xf32>
    %c0_54 = arith.constant 0 : index
    %c23 = arith.constant 23 : index
    %226 = vector.load %arg4[%c0_54, %c23] : memref<2x25xf32, #tpu.memory_space<vmem>>, vector<2x1xf32>
    %227 = vector.broadcast %226 : vector<2x1xf32> to vector<2x256xf32>
    %228 = arith.mulf %227, %225 : vector<2x256xf32>
    %229 = vector.broadcast %51 : vector<1x256xf32> to vector<2x256xf32>
    %230 = arith.mulf %228, %229 : vector<2x256xf32>
    %231 = arith.addf %224, %230 : vector<2x256xf32>
    %232 = vector.extract_strided_slice %78 {offsets = [0, 68], sizes = [2, 256], strides = [1, 1]} : vector<2x324xf32> to vector<2x256xf32>
    %c0_55 = arith.constant 0 : index
    %c24 = arith.constant 24 : index
    %233 = vector.load %arg4[%c0_55, %c24] : memref<2x25xf32, #tpu.memory_space<vmem>>, vector<2x1xf32>
    %234 = vector.broadcast %233 : vector<2x1xf32> to vector<2x256xf32>
    %235 = arith.mulf %234, %232 : vector<2x256xf32>
    %236 = vector.broadcast %62 : vector<1x256xf32> to vector<2x256xf32>
    %237 = arith.mulf %235, %236 : vector<2x256xf32>
    %238 = arith.addf %231, %237 : vector<2x256xf32>
    %239 = arith.addf %110, %142 : vector<2x256xf32>
    %240 = arith.addf %174, %206 : vector<2x256xf32>
    %241 = arith.addf %239, %240 : vector<2x256xf32>
    %242 = arith.addf %241, %238 : vector<2x256xf32>
    %c0_56 = arith.constant 0 : index
    %c0_57 = arith.constant 0 : index
    %243 = vector.load %arg5[%c0_56, %c0_57] : memref<2x1xf32, #tpu.memory_space<vmem>>, vector<2x1xf32>
    %244 = vector.broadcast %243 : vector<2x1xf32> to vector<2x256xf32>
    %245 = arith.addf %242, %244 : vector<2x256xf32>
    %246 = arith.negf %245 : vector<2x256xf32>
    %247 = math.exp %246 : vector<2x256xf32>
    %cst_58 = arith.constant 1.000000e+00 : f32
    %248 = vector.broadcast %cst_58 : f32 to vector<2x256xf32>
    %249 = arith.addf %248, %247 : vector<2x256xf32>
    %250 = arith.divf %248, %249 : vector<2x256xf32>
    %251 = arith.mulf %245, %250 : vector<2x256xf32>
    %c0_59 = arith.constant 0 : index
    %c0_60 = arith.constant 0 : index
    %252 = vector.load %arg6[%c0_59, %c0_60] : memref<4x2xf32, #tpu.memory_space<vmem>>, vector<4x2xf32>
    %cst_61 = arith.constant dense<0.000000e+00> : vector<4x256xf32>
    %253 = tpu.matmul %252, %73, %cst_61 {dimension_numbers = #tpu.dot_dimension_numbers<[1], [0], [0], [1], [0, 0, 1, 1], [], []>} : vector<4x2xf32>, vector<2x256xf32>, vector<4x256xf32> -> vector<4x256xf32>
    %c0_62 = arith.constant 0 : index
    %c0_63 = arith.constant 0 : index
    %254 = vector.load %arg7[%c0_62, %c0_63] : memref<4x2xf32, #tpu.memory_space<vmem>>, vector<4x2xf32>
    %cst_64 = arith.constant dense<0.000000e+00> : vector<4x256xf32>
    %255 = tpu.matmul %254, %251, %cst_64 {dimension_numbers = #tpu.dot_dimension_numbers<[1], [0], [0], [1], [0, 0, 1, 1], [], []>} : vector<4x2xf32>, vector<2x256xf32>, vector<4x256xf32> -> vector<4x256xf32>
    %256 = arith.addf %253, %255 : vector<4x256xf32>
    %c0_65 = arith.constant 0 : index
    %c0_66 = arith.constant 0 : index
    %257 = vector.load %arg8[%c0_65, %c0_66] : memref<4x1xf32, #tpu.memory_space<vmem>>, vector<4x1xf32>
    %258 = vector.broadcast %257 : vector<4x1xf32> to vector<4x256xf32>
    %259 = arith.addf %256, %258 : vector<4x256xf32>
    %cst_67 = arith.constant 0.000000e+00 : f32
    %260 = vector.broadcast %cst_67 : f32 to vector<4x34xf32>
    %c0_68 = arith.constant 0 : index
    %c0_69 = arith.constant 0 : index
    %261 = vector.load %arg13[%c0_68, %c0_69] : memref<4x324xf32, #tpu.memory_space<vmem>>, vector<4x34xf32>
    tpu.vector_store %arg13[%c0_68, %c0_69], %260 {strides = array<i32>} : memref<4x324xf32, #tpu.memory_space<vmem>>, vector<4x34xf32>,
    %c0_70 = arith.constant 0 : index
    %c290_71 = arith.constant 290 : index
    %262 = vector.load %arg13[%c0_70, %c290_71] : memref<4x324xf32, #tpu.memory_space<vmem>>, vector<4x34xf32>
    tpu.vector_store %arg13[%c0_70, %c290_71], %260 {strides = array<i32>} : memref<4x324xf32, #tpu.memory_space<vmem>>, vector<4x34xf32>,
    %c0_72 = arith.constant 0 : index
    %c34_73 = arith.constant 34 : index
    %263 = vector.load %arg13[%c0_72, %c34_73] : memref<4x324xf32, #tpu.memory_space<vmem>>, vector<4x256xf32>
    tpu.vector_store %arg13[%c0_72, %c34_73], %259 {strides = array<i32>} : memref<4x324xf32, #tpu.memory_space<vmem>>, vector<4x256xf32>,
    %c0_74 = arith.constant 0 : index
    %c0_75 = arith.constant 0 : index
    %264 = vector.load %arg13[%c0_74, %c0_75] : memref<4x324xf32, #tpu.memory_space<vmem>>, vector<4x324xf32>
    %265 = vector.extract_strided_slice %264 {offsets = [0, 0], sizes = [4, 256], strides = [1, 1]} : vector<4x324xf32> to vector<4x256xf32>
    %c0_76 = arith.constant 0 : index
    %c0_77 = arith.constant 0 : index
    %266 = vector.load %arg9[%c0_76, %c0_77] : memref<4x25xf32, #tpu.memory_space<vmem>>, vector<4x1xf32>
    %267 = vector.broadcast %266 : vector<4x1xf32> to vector<4x256xf32>
    %268 = arith.mulf %267, %265 : vector<4x256xf32>
    %269 = vector.broadcast %29 : vector<1x256xf32> to vector<4x256xf32>
    %270 = arith.mulf %268, %269 : vector<4x256xf32>
    %271 = vector.extract_strided_slice %264 {offsets = [0, 1], sizes = [4, 256], strides = [1, 1]} : vector<4x324xf32> to vector<4x256xf32>
    %c0_78 = arith.constant 0 : index
    %c1_79 = arith.constant 1 : index
    %272 = vector.load %arg9[%c0_78, %c1_79] : memref<4x25xf32, #tpu.memory_space<vmem>>, vector<4x1xf32>
    %273 = vector.broadcast %272 : vector<4x1xf32> to vector<4x256xf32>
    %274 = arith.mulf %273, %271 : vector<4x256xf32>
    %275 = vector.broadcast %40 : vector<1x256xf32> to vector<4x256xf32>
    %276 = arith.mulf %274, %275 : vector<4x256xf32>
    %277 = arith.addf %270, %276 : vector<4x256xf32>
    %278 = vector.extract_strided_slice %264 {offsets = [0, 2], sizes = [4, 256], strides = [1, 1]} : vector<4x324xf32> to vector<4x256xf32>
    %c0_80 = arith.constant 0 : index
    %c2_81 = arith.constant 2 : index
    %279 = vector.load %arg9[%c0_80, %c2_81] : memref<4x25xf32, #tpu.memory_space<vmem>>, vector<4x1xf32>
    %280 = vector.broadcast %279 : vector<4x1xf32> to vector<4x256xf32>
    %281 = arith.mulf %280, %278 : vector<4x256xf32>
    %282 = arith.addf %277, %281 : vector<4x256xf32>
    %283 = vector.extract_strided_slice %264 {offsets = [0, 3], sizes = [4, 256], strides = [1, 1]} : vector<4x324xf32> to vector<4x256xf32>
    %c0_82 = arith.constant 0 : index
    %c3_83 = arith.constant 3 : index
    %284 = vector.load %arg9[%c0_82, %c3_83] : memref<4x25xf32, #tpu.memory_space<vmem>>, vector<4x1xf32>
    %285 = vector.broadcast %284 : vector<4x1xf32> to vector<4x256xf32>
    %286 = arith.mulf %285, %283 : vector<4x256xf32>
    %287 = vector.broadcast %51 : vector<1x256xf32> to vector<4x256xf32>
    %288 = arith.mulf %286, %287 : vector<4x256xf32>
    %289 = arith.addf %282, %288 : vector<4x256xf32>
    %290 = vector.extract_strided_slice %264 {offsets = [0, 4], sizes = [4, 256], strides = [1, 1]} : vector<4x324xf32> to vector<4x256xf32>
    %c0_84 = arith.constant 0 : index
    %c4_85 = arith.constant 4 : index
    %291 = vector.load %arg9[%c0_84, %c4_85] : memref<4x25xf32, #tpu.memory_space<vmem>>, vector<4x1xf32>
    %292 = vector.broadcast %291 : vector<4x1xf32> to vector<4x256xf32>
    %293 = arith.mulf %292, %290 : vector<4x256xf32>
    %294 = vector.broadcast %62 : vector<1x256xf32> to vector<4x256xf32>
    %295 = arith.mulf %293, %294 : vector<4x256xf32>
    %296 = arith.addf %289, %295 : vector<4x256xf32>
    %297 = vector.extract_strided_slice %264 {offsets = [0, 16], sizes = [4, 256], strides = [1, 1]} : vector<4x324xf32> to vector<4x256xf32>
    %c0_86 = arith.constant 0 : index
    %c5_87 = arith.constant 5 : index
    %298 = vector.load %arg9[%c0_86, %c5_87] : memref<4x25xf32, #tpu.memory_space<vmem>>, vector<4x1xf32>
    %299 = vector.broadcast %298 : vector<4x1xf32> to vector<4x256xf32>
    %300 = arith.mulf %299, %297 : vector<4x256xf32>
    %301 = vector.broadcast %29 : vector<1x256xf32> to vector<4x256xf32>
    %302 = arith.mulf %300, %301 : vector<4x256xf32>
    %303 = vector.extract_strided_slice %264 {offsets = [0, 17], sizes = [4, 256], strides = [1, 1]} : vector<4x324xf32> to vector<4x256xf32>
    %c0_88 = arith.constant 0 : index
    %c6_89 = arith.constant 6 : index
    %304 = vector.load %arg9[%c0_88, %c6_89] : memref<4x25xf32, #tpu.memory_space<vmem>>, vector<4x1xf32>
    %305 = vector.broadcast %304 : vector<4x1xf32> to vector<4x256xf32>
    %306 = arith.mulf %305, %303 : vector<4x256xf32>
    %307 = vector.broadcast %40 : vector<1x256xf32> to vector<4x256xf32>
    %308 = arith.mulf %306, %307 : vector<4x256xf32>
    %309 = arith.addf %302, %308 : vector<4x256xf32>
    %310 = vector.extract_strided_slice %264 {offsets = [0, 18], sizes = [4, 256], strides = [1, 1]} : vector<4x324xf32> to vector<4x256xf32>
    %c0_90 = arith.constant 0 : index
    %c7_91 = arith.constant 7 : index
    %311 = vector.load %arg9[%c0_90, %c7_91] : memref<4x25xf32, #tpu.memory_space<vmem>>, vector<4x1xf32>
    %312 = vector.broadcast %311 : vector<4x1xf32> to vector<4x256xf32>
    %313 = arith.mulf %312, %310 : vector<4x256xf32>
    %314 = arith.addf %309, %313 : vector<4x256xf32>
    %315 = vector.extract_strided_slice %264 {offsets = [0, 19], sizes = [4, 256], strides = [1, 1]} : vector<4x324xf32> to vector<4x256xf32>
    %c0_92 = arith.constant 0 : index
    %c8_93 = arith.constant 8 : index
    %316 = vector.load %arg9[%c0_92, %c8_93] : memref<4x25xf32, #tpu.memory_space<vmem>>, vector<4x1xf32>
    %317 = vector.broadcast %316 : vector<4x1xf32> to vector<4x256xf32>
    %318 = arith.mulf %317, %315 : vector<4x256xf32>
    %319 = vector.broadcast %51 : vector<1x256xf32> to vector<4x256xf32>
    %320 = arith.mulf %318, %319 : vector<4x256xf32>
    %321 = arith.addf %314, %320 : vector<4x256xf32>
    %322 = vector.extract_strided_slice %264 {offsets = [0, 20], sizes = [4, 256], strides = [1, 1]} : vector<4x324xf32> to vector<4x256xf32>
    %c0_94 = arith.constant 0 : index
    %c9_95 = arith.constant 9 : index
    %323 = vector.load %arg9[%c0_94, %c9_95] : memref<4x25xf32, #tpu.memory_space<vmem>>, vector<4x1xf32>
    %324 = vector.broadcast %323 : vector<4x1xf32> to vector<4x256xf32>
    %325 = arith.mulf %324, %322 : vector<4x256xf32>
    %326 = vector.broadcast %62 : vector<1x256xf32> to vector<4x256xf32>
    %327 = arith.mulf %325, %326 : vector<4x256xf32>
    %328 = arith.addf %321, %327 : vector<4x256xf32>
    %329 = vector.extract_strided_slice %264 {offsets = [0, 32], sizes = [4, 256], strides = [1, 1]} : vector<4x324xf32> to vector<4x256xf32>
    %c0_96 = arith.constant 0 : index
    %c10_97 = arith.constant 10 : index
    %330 = vector.load %arg9[%c0_96, %c10_97] : memref<4x25xf32, #tpu.memory_space<vmem>>, vector<4x1xf32>
    %331 = vector.broadcast %330 : vector<4x1xf32> to vector<4x256xf32>
    %332 = arith.mulf %331, %329 : vector<4x256xf32>
    %333 = vector.broadcast %29 : vector<1x256xf32> to vector<4x256xf32>
    %334 = arith.mulf %332, %333 : vector<4x256xf32>
    %335 = vector.extract_strided_slice %264 {offsets = [0, 33], sizes = [4, 256], strides = [1, 1]} : vector<4x324xf32> to vector<4x256xf32>
    %c0_98 = arith.constant 0 : index
    %c11_99 = arith.constant 11 : index
    %336 = vector.load %arg9[%c0_98, %c11_99] : memref<4x25xf32, #tpu.memory_space<vmem>>, vector<4x1xf32>
    %337 = vector.broadcast %336 : vector<4x1xf32> to vector<4x256xf32>
    %338 = arith.mulf %337, %335 : vector<4x256xf32>
    %339 = vector.broadcast %40 : vector<1x256xf32> to vector<4x256xf32>
    %340 = arith.mulf %338, %339 : vector<4x256xf32>
    %341 = arith.addf %334, %340 : vector<4x256xf32>
    %342 = vector.extract_strided_slice %264 {offsets = [0, 34], sizes = [4, 256], strides = [1, 1]} : vector<4x324xf32> to vector<4x256xf32>
    %c0_100 = arith.constant 0 : index
    %c12_101 = arith.constant 12 : index
    %343 = vector.load %arg9[%c0_100, %c12_101] : memref<4x25xf32, #tpu.memory_space<vmem>>, vector<4x1xf32>
    %344 = vector.broadcast %343 : vector<4x1xf32> to vector<4x256xf32>
    %345 = arith.mulf %344, %342 : vector<4x256xf32>
    %346 = arith.addf %341, %345 : vector<4x256xf32>
    %347 = vector.extract_strided_slice %264 {offsets = [0, 35], sizes = [4, 256], strides = [1, 1]} : vector<4x324xf32> to vector<4x256xf32>
    %c0_102 = arith.constant 0 : index
    %c13_103 = arith.constant 13 : index
    %348 = vector.load %arg9[%c0_102, %c13_103] : memref<4x25xf32, #tpu.memory_space<vmem>>, vector<4x1xf32>
    %349 = vector.broadcast %348 : vector<4x1xf32> to vector<4x256xf32>
    %350 = arith.mulf %349, %347 : vector<4x256xf32>
    %351 = vector.broadcast %51 : vector<1x256xf32> to vector<4x256xf32>
    %352 = arith.mulf %350, %351 : vector<4x256xf32>
    %353 = arith.addf %346, %352 : vector<4x256xf32>
    %354 = vector.extract_strided_slice %264 {offsets = [0, 36], sizes = [4, 256], strides = [1, 1]} : vector<4x324xf32> to vector<4x256xf32>
    %c0_104 = arith.constant 0 : index
    %c14_105 = arith.constant 14 : index
    %355 = vector.load %arg9[%c0_104, %c14_105] : memref<4x25xf32, #tpu.memory_space<vmem>>, vector<4x1xf32>
    %356 = vector.broadcast %355 : vector<4x1xf32> to vector<4x256xf32>
    %357 = arith.mulf %356, %354 : vector<4x256xf32>
    %358 = vector.broadcast %62 : vector<1x256xf32> to vector<4x256xf32>
    %359 = arith.mulf %357, %358 : vector<4x256xf32>
    %360 = arith.addf %353, %359 : vector<4x256xf32>
    %361 = vector.extract_strided_slice %264 {offsets = [0, 48], sizes = [4, 256], strides = [1, 1]} : vector<4x324xf32> to vector<4x256xf32>
    %c0_106 = arith.constant 0 : index
    %c15_107 = arith.constant 15 : index
    %362 = vector.load %arg9[%c0_106, %c15_107] : memref<4x25xf32, #tpu.memory_space<vmem>>, vector<4x1xf32>
    %363 = vector.broadcast %362 : vector<4x1xf32> to vector<4x256xf32>
    %364 = arith.mulf %363, %361 : vector<4x256xf32>
    %365 = vector.broadcast %29 : vector<1x256xf32> to vector<4x256xf32>
    %366 = arith.mulf %364, %365 : vector<4x256xf32>
    %367 = vector.extract_strided_slice %264 {offsets = [0, 49], sizes = [4, 256], strides = [1, 1]} : vector<4x324xf32> to vector<4x256xf32>
    %c0_108 = arith.constant 0 : index
    %c16_109 = arith.constant 16 : index
    %368 = vector.load %arg9[%c0_108, %c16_109] : memref<4x25xf32, #tpu.memory_space<vmem>>, vector<4x1xf32>
    %369 = vector.broadcast %368 : vector<4x1xf32> to vector<4x256xf32>
    %370 = arith.mulf %369, %367 : vector<4x256xf32>
    %371 = vector.broadcast %40 : vector<1x256xf32> to vector<4x256xf32>
    %372 = arith.mulf %370, %371 : vector<4x256xf32>
    %373 = arith.addf %366, %372 : vector<4x256xf32>
    %374 = vector.extract_strided_slice %264 {offsets = [0, 50], sizes = [4, 256], strides = [1, 1]} : vector<4x324xf32> to vector<4x256xf32>
    %c0_110 = arith.constant 0 : index
    %c17_111 = arith.constant 17 : index
    %375 = vector.load %arg9[%c0_110, %c17_111] : memref<4x25xf32, #tpu.memory_space<vmem>>, vector<4x1xf32>
    %376 = vector.broadcast %375 : vector<4x1xf32> to vector<4x256xf32>
    %377 = arith.mulf %376, %374 : vector<4x256xf32>
    %378 = arith.addf %373, %377 : vector<4x256xf32>
    %379 = vector.extract_strided_slice %264 {offsets = [0, 51], sizes = [4, 256], strides = [1, 1]} : vector<4x324xf32> to vector<4x256xf32>
    %c0_112 = arith.constant 0 : index
    %c18_113 = arith.constant 18 : index
    %380 = vector.load %arg9[%c0_112, %c18_113] : memref<4x25xf32, #tpu.memory_space<vmem>>, vector<4x1xf32>
    %381 = vector.broadcast %380 : vector<4x1xf32> to vector<4x256xf32>
    %382 = arith.mulf %381, %379 : vector<4x256xf32>
    %383 = vector.broadcast %51 : vector<1x256xf32> to vector<4x256xf32>
    %384 = arith.mulf %382, %383 : vector<4x256xf32>
    %385 = arith.addf %378, %384 : vector<4x256xf32>
    %386 = vector.extract_strided_slice %264 {offsets = [0, 52], sizes = [4, 256], strides = [1, 1]} : vector<4x324xf32> to vector<4x256xf32>
    %c0_114 = arith.constant 0 : index
    %c19_115 = arith.constant 19 : index
    %387 = vector.load %arg9[%c0_114, %c19_115] : memref<4x25xf32, #tpu.memory_space<vmem>>, vector<4x1xf32>
    %388 = vector.broadcast %387 : vector<4x1xf32> to vector<4x256xf32>
    %389 = arith.mulf %388, %386 : vector<4x256xf32>
    %390 = vector.broadcast %62 : vector<1x256xf32> to vector<4x256xf32>
    %391 = arith.mulf %389, %390 : vector<4x256xf32>
    %392 = arith.addf %385, %391 : vector<4x256xf32>
    %393 = vector.extract_strided_slice %264 {offsets = [0, 64], sizes = [4, 256], strides = [1, 1]} : vector<4x324xf32> to vector<4x256xf32>
    %c0_116 = arith.constant 0 : index
    %c20_117 = arith.constant 20 : index
    %394 = vector.load %arg9[%c0_116, %c20_117] : memref<4x25xf32, #tpu.memory_space<vmem>>, vector<4x1xf32>
    %395 = vector.broadcast %394 : vector<4x1xf32> to vector<4x256xf32>
    %396 = arith.mulf %395, %393 : vector<4x256xf32>
    %397 = vector.broadcast %29 : vector<1x256xf32> to vector<4x256xf32>
    %398 = arith.mulf %396, %397 : vector<4x256xf32>
    %399 = vector.extract_strided_slice %264 {offsets = [0, 65], sizes = [4, 256], strides = [1, 1]} : vector<4x324xf32> to vector<4x256xf32>
    %c0_118 = arith.constant 0 : index
    %c21_119 = arith.constant 21 : index
    %400 = vector.load %arg9[%c0_118, %c21_119] : memref<4x25xf32, #tpu.memory_space<vmem>>, vector<4x1xf32>
    %401 = vector.broadcast %400 : vector<4x1xf32> to vector<4x256xf32>
    %402 = arith.mulf %401, %399 : vector<4x256xf32>
    %403 = vector.broadcast %40 : vector<1x256xf32> to vector<4x256xf32>
    %404 = arith.mulf %402, %403 : vector<4x256xf32>
    %405 = arith.addf %398, %404 : vector<4x256xf32>
    %406 = vector.extract_strided_slice %264 {offsets = [0, 66], sizes = [4, 256], strides = [1, 1]} : vector<4x324xf32> to vector<4x256xf32>
    %c0_120 = arith.constant 0 : index
    %c22_121 = arith.constant 22 : index
    %407 = vector.load %arg9[%c0_120, %c22_121] : memref<4x25xf32, #tpu.memory_space<vmem>>, vector<4x1xf32>
    %408 = vector.broadcast %407 : vector<4x1xf32> to vector<4x256xf32>
    %409 = arith.mulf %408, %406 : vector<4x256xf32>
    %410 = arith.addf %405, %409 : vector<4x256xf32>
    %411 = vector.extract_strided_slice %264 {offsets = [0, 67], sizes = [4, 256], strides = [1, 1]} : vector<4x324xf32> to vector<4x256xf32>
    %c0_122 = arith.constant 0 : index
    %c23_123 = arith.constant 23 : index
    %412 = vector.load %arg9[%c0_122, %c23_123] : memref<4x25xf32, #tpu.memory_space<vmem>>, vector<4x1xf32>
    %413 = vector.broadcast %412 : vector<4x1xf32> to vector<4x256xf32>
    %414 = arith.mulf %413, %411 : vector<4x256xf32>
    %415 = vector.broadcast %51 : vector<1x256xf32> to vector<4x256xf32>
    %416 = arith.mulf %414, %415 : vector<4x256xf32>
    %417 = arith.addf %410, %416 : vector<4x256xf32>
    %418 = vector.extract_strided_slice %264 {offsets = [0, 68], sizes = [4, 256], strides = [1, 1]} : vector<4x324xf32> to vector<4x256xf32>
    %c0_124 = arith.constant 0 : index
    %c24_125 = arith.constant 24 : index
    %419 = vector.load %arg9[%c0_124, %c24_125] : memref<4x25xf32, #tpu.memory_space<vmem>>, vector<4x1xf32>
    %420 = vector.broadcast %419 : vector<4x1xf32> to vector<4x256xf32>
    %421 = arith.mulf %420, %418 : vector<4x256xf32>
    %422 = vector.broadcast %62 : vector<1x256xf32> to vector<4x256xf32>
    %423 = arith.mulf %421, %422 : vector<4x256xf32>
    %424 = arith.addf %417, %423 : vector<4x256xf32>
    %425 = arith.addf %296, %328 : vector<4x256xf32>
    %426 = arith.addf %360, %392 : vector<4x256xf32>
    %427 = arith.addf %425, %426 : vector<4x256xf32>
    %428 = arith.addf %427, %424 : vector<4x256xf32>
    %c0_126 = arith.constant 0 : index
    %c0_127 = arith.constant 0 : index
    %429 = vector.load %arg10[%c0_126, %c0_127] : memref<4x1xf32, #tpu.memory_space<vmem>>, vector<4x1xf32>
    %430 = vector.broadcast %429 : vector<4x1xf32> to vector<4x256xf32>
    %431 = arith.addf %428, %430 : vector<4x256xf32>
    %432 = vector.extract_strided_slice %1 {offsets = [0, 0], sizes = [4, 256], strides = [1, 1]} : vector<8x256xf32> to vector<4x256xf32>
    %433 = arith.addf %259, %432 : vector<4x256xf32>
    %c0_128 = arith.constant 0 : index
    %c0_129 = arith.constant 0 : index
    %c0_130 = arith.constant 0 : index
    %434 = vector.load %arg11[%c0_128, %c0_129, %c0_130] : memref<1x8x256xf32, #tpu.memory_space<vmem>>, vector<1x4x256xf32>
    %435 = vector.shape_cast %434 : vector<1x4x256xf32> to vector<4x256xf32>
    %436 = vector.shape_cast %433 : vector<4x256xf32> to vector<1x4x256xf32>
    tpu.vector_store %arg11[%c0_128, %c0_129, %c0_130], %436 {strides = array<i32>} : memref<1x8x256xf32, #tpu.memory_space<vmem>>, vector<1x4x256xf32>,
    %437 = vector.extract_strided_slice %1 {offsets = [4, 0], sizes = [4, 256], strides = [1, 1]} : vector<8x256xf32> to vector<4x256xf32>
    %438 = arith.addf %431, %437 : vector<4x256xf32>
    %c0_131 = arith.constant 0 : index
    %c4_132 = arith.constant 4 : index
    %c0_133 = arith.constant 0 : index
    %439 = vector.load %arg11[%c0_131, %c4_132, %c0_133] : memref<1x8x256xf32, #tpu.memory_space<vmem>>, vector<1x4x256xf32>
    %440 = vector.shape_cast %439 : vector<1x4x256xf32> to vector<4x256xf32>
    %441 = vector.shape_cast %438 : vector<4x256xf32> to vector<1x4x256xf32>
    tpu.vector_store %arg11[%c0_131, %c4_132, %c0_133], %441 {strides = array<i32>} : memref<1x8x256xf32, #tpu.memory_space<vmem>>, vector<1x4x256xf32>,
    return
  }
  func.func @transform_0(%arg0: i32) -> (i32, i32, i32) {
    %c0_i32 = arith.constant 0 : i32
    %c0_i32_0 = arith.constant 0 : i32
    %c0_i32_1 = arith.constant 0 : i32
    return %arg0, %c0_i32, %c0_i32_0 : i32, i32, i32
  }
  func.func @transform_1(%arg0: i32) -> (i32, i32) {
    %c0_i32 = arith.constant 0 : i32
    %c0_i32_0 = arith.constant 0 : i32
    %c0_i32_1 = arith.constant 0 : i32
    return %c0_i32, %c0_i32_0 : i32, i32
  }
  func.func @transform_2(%arg0: i32) -> (i32, i32) {
    %c0_i32 = arith.constant 0 : i32
    %c0_i32_0 = arith.constant 0 : i32
    %c0_i32_1 = arith.constant 0 : i32
    return %c0_i32, %c0_i32_0 : i32, i32
  }
  func.func @transform_3(%arg0: i32) -> (i32, i32) {
    %c0_i32 = arith.constant 0 : i32
    %c0_i32_0 = arith.constant 0 : i32
    %c0_i32_1 = arith.constant 0 : i32
    return %c0_i32, %c0_i32_0 : i32, i32
  }
  func.func @transform_4(%arg0: i32) -> (i32, i32) {
    %c0_i32 = arith.constant 0 : i32
    %c0_i32_0 = arith.constant 0 : i32
    %c0_i32_1 = arith.constant 0 : i32
    return %c0_i32, %c0_i32_0 : i32, i32
  }
  func.func @transform_5(%arg0: i32) -> (i32, i32) {
    %c0_i32 = arith.constant 0 : i32
    %c0_i32_0 = arith.constant 0 : i32
    %c0_i32_1 = arith.constant 0 : i32
    return %c0_i32, %c0_i32_0 : i32, i32
  }
  func.func @transform_6(%arg0: i32) -> (i32, i32) {
    %c0_i32 = arith.constant 0 : i32
    %c0_i32_0 = arith.constant 0 : i32
    %c0_i32_1 = arith.constant 0 : i32
    return %c0_i32, %c0_i32_0 : i32, i32
  }
  func.func @transform_7(%arg0: i32) -> (i32, i32) {
    %c0_i32 = arith.constant 0 : i32
    %c0_i32_0 = arith.constant 0 : i32
    %c0_i32_1 = arith.constant 0 : i32
    return %c0_i32, %c0_i32_0 : i32, i32
  }
  func.func @transform_8(%arg0: i32) -> (i32, i32) {
    %c0_i32 = arith.constant 0 : i32
    %c0_i32_0 = arith.constant 0 : i32
    %c0_i32_1 = arith.constant 0 : i32
    return %c0_i32, %c0_i32_0 : i32, i32
  }
  func.func @transform_9(%arg0: i32) -> (i32, i32) {
    %c0_i32 = arith.constant 0 : i32
    %c0_i32_0 = arith.constant 0 : i32
    %c0_i32_1 = arith.constant 0 : i32
    return %c0_i32, %c0_i32_0 : i32, i32
  }
  func.func @transform_10(%arg0: i32) -> (i32, i32, i32) {
    %c0_i32 = arith.constant 0 : i32
    %c0_i32_0 = arith.constant 0 : i32
    %c0_i32_1 = arith.constant 0 : i32
    return %arg0, %c0_i32, %c0_i32_0 : i32, i32, i32
  }
}

</mosaic_0001>

<bundles_post_ra>
// kernel: ghost_bottleneck_forward.1
= control target key start
LH: loop header
LB: loop body
LE: loop exit
PB: predicated region body
PF: predicated region fallthrough
CT: control target
= control target key end

     0   :  { %s2239_s13 = smov 0   ;;  %s3644_s0 = inlined_call_operand.vmem [shape: f32[2,8,256], index: 0, kind: input, shape index: {}]   ;;  %s3645_s1 = inlined_call_operand.vmem [shape: f32[2,8], index: 1, kind: input, shape index: {}]   ;;  %s3646_s2 = inlined_call_operand.vmem [shape: f32[2,1], index: 2, kind: input, shape index: {}]   ;;  %s3647_s3 = inlined_call_operand.vmem [shape: f32[2,25], index: 3, kind: input, shape index: {}]   ;;  %s3648_s4 = inlined_call_operand.vmem [shape: f32[2,1], index: 4, kind: input, shape index: {}]   ;;  %s3649_s5 = inlined_call_operand.vmem [shape: f32[4,2], index: 5, kind: input, shape index: {}]   ;;  %s3650_s6 = inlined_call_operand.vmem [shape: f32[4,2], index: 6, kind: input, shape index: {}]   ;;  %s3651_s7 = inlined_call_operand.vmem [shape: f32[4,1], index: 7, kind: input, shape index: {}]   ;;  %s3652_s8 = inlined_call_operand.vmem [shape: f32[4,25], index: 8, kind: input, shape index: {}]   ;;  %s3653_s9 = inlined_call_operand.vmem [shape: f32[4,1], index: 9, kind: input, shape index: {}]   ;;  %s3654_s10 = inlined_call_operand.vmem [shape: f32[2,8,256], index: 10, kind: output, shape index: {}]  }
   0x1   :  { %3777 = sst [smem:[#allocation48_spill]] %s3644_s0 }
   0x2   :  { %3778 = sst [smem:[#allocation49_spill]] %s3645_s1 }
   0x3   :  { %3779 = sst [smem:[#allocation50_spill]] %s3646_s2 }
   0x4 LB: > { %s1958_s14 = sadd.s32 4294967295, %s2130_s13   ;;  %p1962_p0 = scmp.ge.s32.totalorder %s2130_s13, 1  ;;  %s2130_s13 = sphi %s2239_s13, %s20_s13  }
   0x5   : > { %p312_p1 = scmp.lt.s32.totalorder %s2130_s13, 3 }
   0x7   : > { %p313_p2 = pnand %p1962_p0, %p312_p1 }
   0x9   : > { %316 = sbr.rel (%p313_p2) target bundleno = 1384 (0x568), region = 60 }
  0x10   : > { %p350_p3 = scmp.lt.s32.totalorder %s1958_s14, 1  ;;  %v3699_v0 = vmov 0.0   ;;  %v3707_v1 = vmov 0   ;;  %s3780_s2 = sld [smem:[#allocation50_spill]]  ;;  %v679_v3 = vld [vmem:[%s3647_s3] sm:$0x3] }
  0x11   : > { %512 = vmatprep.mubr.f32.mxu0 %v3699_v0  ;;  %2052 = vset.pattern.permute.xlu0 %v3707_v1  ;;  %s3781_s0 = sld [smem:[#allocation48_spill]]  ;;  %s3782_s1 = sld [smem:[#allocation49_spill]]  ;;  %vm444_vm0 = vcmask 64512   ;;  %v3708_v7 = vmov 5   ;;  %v811_v8 = vld [vmem:[%s3647_s3] sm:$0x3] }
  0x12   : > { %s3990_s14 = smov (!%p350_p3, %s1958_s14), 1  ;;  %2053 = vset.pattern.permute.xlu1 %v3707_v1  ;;  %1230 = vmatprep.mubr.f32.mxu1 %v3699_v0  ;;  %v3695_v9 = vmov 11   ;;  %v612_v10 = vld [vmem:[%s3647_s3] sm:$0x3]  ;;  %v2136_v11 = vmov 2   ;;  %v3698_v13 = vmov 8  }
  0x13   : > { %s3656_s17 = sshll.u32 %s3990_s14, 4  ;;  %v744_v12 = vld [vmem:[%s3647_s3] sm:$0x3]  ;;  %v3687_v15 = vmov 17   ;;  %v3685_v17 = vmov 21   ;;  %v3714_v19 = vmov 4  }
  0x14   : > { %v945_v14 = vld [vmem:[%s3647_s3] sm:$0x3]  ;;  %v3697_v21 = vmov 9   ;;  %v3690_v22 = vmov 14   ;;  %v3716_v24 = vmov 19   ;;  %v3683_v26 = vmov 23  }
  0x15   : > { %v1033_v16 = vld [vmem:[%s3647_s3] sm:$0x3]  ;;  %v3713_v28 = vmov 24   ;;  %v2146_v32 = vmov 1   ;;  %v3706_v34 = vmov 6   ;;  %vm533_vm1 = vcmask 271360  }
  0x16   : > { %v438_v2 = vld [vmem:[%s3780_s2] sm:$0x3]  ;;  %534 = vst.msk [vmem:[#allocation2] sm:$0x3] %vm533_vm1, %v3699_v0  ;;  %vm535_vm2 = vcmask 550160   ;;  %v3696_v36 = vmov 10  }
  0x17   : > { %441 = vperm.xlu0 %2052, %v438_v2   ;;  %s2265_s22 = scalar_lea.vmem %s3781_s0, %s3656_s17  ;;  %v437_v6 = vld [vmem:[%s3782_s1] sm:$0x3]  ;;  %536 = vst.msk [vmem:[#allocation2 + $0x4] sm:$0x3] %vm535_vm2, %v3699_v0  ;;  %v3689_v38 = vmov 15   ;;  %v3688_v40 = vmov 16  }
  0x18   : > { %v361_v4 = vld [vmem:[%s2265_s22 + $0x8] sm:$0xff]  ;;  %v360_v5 = vld [vmem:[%s2265_s22] sm:$0xff]  ;;  %v3717_v42 = vmov 3   ;;  %v3701_v44 = vmov 7   ;;  %v3694_v46 = vmov 12   ;;  %v3693_v48 = vmov 13  }
  0x19   : > { %448 = vmatprep.subr.mxu0 %v361_v4  ;;  %v656_v18 = vld [vmem:[%s3647_s3] sm:$0x3]  ;;  %v3718_v50 = vmov 18   ;;  %v3686_v52 = vmov 20   ;;  %v3684_v54 = vmov 22   ;;  %v3715_v4 = vlaneseq  ;;  %s3655_s25 = smov 34  }
  0x1a   : > { %449 = vmatpush1.msra.mxu0 %v360_v5  ;;  %v767_v20 = vld [vmem:[%s3647_s3] sm:$0x3]  ;;  %v2158_v5 = vmov 1983009808   ;;  %vm553_vm3 = vcmask 1041680   ;;  %vm554_vm4 = vcmask 1043458  }
  0x1b   : > { %2055 = vset.pattern.permute.xlu0 %v3708_v7  ;;  %1975 = vmatmul.mubr.msk.f32.vlgmr.msra.gmra.mrb[0].mxu0 %vm444_vm0, %v437_v6  ;;  %v878_v23 = vld [vmem:[%s3647_s3] sm:$0x3]  ;;  %v541_v6 = vunpack.c.l.s4 %v2158_v5  ;;  %vm555_vm5 = vmor %vm554_vm4, %vm553_vm3  ;;  %vm556_vm6 = vcmask 275460   ;;  %vm3748_vm7 = vcmask 277504   ;;  %s3671_s26 = smov 111   ;;  %s3673_s27 = smov 127  }
  0x1c   : > { %682 = vperm.xlu0 %2055, %v679_v3   ;;  %v989_v25 = vld [vmem:[%s3647_s3] sm:$0x3]  ;;  %vm557_vm8 = vmor %vm556_vm6, %vm555_vm5  ;;  %s3675_s28 = smov 95   ;;  %s3669_s29 = smov 112   ;;  %vm3749_vm9 = vcmask 916480   ;;  %vm3752_vm10 = vcmask 908288  }
  0x1d   : > { %v1077_v27 = vld [vmem:[%s3647_s3] sm:$0x3]  ;;  %s3681_s30 = smov 79   ;;  %s3677_s11 = smov 96   ;;  %vm3747_vm3 = vcmask 1039360   ;;  %vm3753_vm4 = vcmask 777216  }
  0x1e   : > { %v1100_v29 = vld [vmem:[%s3647_s3] sm:$0x3]  ;;  %s3732_s12 = smov 110   ;;  %s3659_s15 = smov 80   ;;  %vm3754_vm5 = vcmask 646144   ;;  %vm645_vm6 = vcmask 1022976  }
  0x1f   : > { %v560_v30 = vld [vmem:[%s3647_s3] sm:$0x3]  ;;  %s3704_s16 = smov 94   ;;  %s3657_s18 = smov 126  }
  0x20   : > { %2058 = vset.pattern.permute.xlu0 %v3695_v9  ;;  %563 = vperm.xlu1 %2053, %v560_v30   ;;  %v581_v31 = vld [vmem:[%s3647_s3] sm:$0x3]  ;;  %s3691_s19 = smov 78   ;;  %s3734_s20 = smov 125  }
  0x21   : > { %814 = vperm.xlu0 %2058, %v811_v8   ;;  %v700_v33 = vld [vmem:[%s3647_s3] sm:$0x3]  ;;  %v542_v8 = vunpack.c.0.s8 %v541_v6  ;;  %s3661_s21 = smov 64   ;;  %s3709_s23 = smov 109  }
  0x22   : > { %v790_v35 = vld [vmem:[%s3647_s3] sm:$0x3]  ;;  %s3663_s24 = smov 124   ;;  %s3667_s17 = smov 92  }
  0x23   : > { %v901_v37 = vld [vmem:[%s3647_s3] sm:$0x3]  ;;  %s3932_s0 = smov 93   ;;  %s3934_s1 = smov 78  }
  0x24   : > { %2054 = vset.pattern.permute.xlu1 %v2146_v32  ;;  %v922_v39 = vld [vmem:[%s3647_s3] sm:$0x3]  ;;  %s3935_s2 = smov 61  }
  0x25   : > { %2061 = vset.pattern.permute.xlu0 %v2136_v11  ;;  %584 = vperm.xlu1 %2054, %v581_v31   ;;  %v633_v41 = vld [vmem:[%s3647_s3] sm:$0x3] }
  0x26   : > { %615 = vperm.xlu0 %2061, %v612_v10   ;;  %v723_v43 = vld [vmem:[%s3647_s3] sm:$0x3]  ;;  %v544_v10 = vshrl.u32 %v3715_v4, 7 }
  0x27   : > { %v834_v45 = vld [vmem:[%s3647_s3] sm:$0x3] }
  0x28   : > { %v855_v47 = vld [vmem:[%s3647_s3] sm:$0x3] }
  0x29   : > { %2056 = vset.pattern.permute.xlu1 %v3706_v34  ;;  %v966_v49 = vld [vmem:[%s3647_s3] sm:$0x3] }
  0x2a   : > { %2064 = vset.pattern.permute.xlu0 %v3698_v13  ;;  %703 = vperm.xlu1 %2056, %v700_v33   ;;  %v1012_v51 = vld [vmem:[%s3647_s3] sm:$0x3] }
  0x2b   : > { %747 = vperm.xlu0 %2064, %v744_v12   ;;  %v1056_v53 = vld [vmem:[%s3647_s3] sm:$0x3] }
  0x2c   : > { %v1131_v34 = vld [vmem:[%s3648_s4] sm:$0x3] }
  0x2e   : > { %2057 = vset.pattern.permute.xlu1 %v3696_v36 }
  0x2f   : > { %2067 = vset.pattern.permute.xlu0 %v3687_v15  ;;  %793 = vperm.xlu1 %2057, %v790_v35  }
  0x30   : > { %948 = vperm.xlu0 %2067, %v945_v14  }
  0x33   : > { %2059 = vset.pattern.permute.xlu1 %v3689_v38 }
  0x34   : > { %2070 = vset.pattern.permute.xlu0 %v3685_v17  ;;  %904 = vperm.xlu1 %2059, %v901_v37  }
  0x35   : > { %1036 = vperm.xlu0 %2070, %v1033_v16  }
  0x38   : > { %2060 = vset.pattern.permute.xlu1 %v3688_v40 }
  0x39   : > { %2071 = vset.pattern.permute.xlu0 %v3714_v19  ;;  %925 = vperm.xlu1 %2060, %v922_v39  }
  0x3a   : > { %659 = vperm.xlu0 %2071, %v656_v18  }
  0x3d   : > { %2062 = vset.pattern.permute.xlu1 %v3717_v42 }
  0x3e   : > { %2072 = vset.pattern.permute.xlu0 %v3697_v21  ;;  %636 = vperm.xlu1 %2062, %v633_v41  }
  0x3f   : > { %770 = vperm.xlu0 %2072, %v767_v20   ;;  %v2375_v20 = vsub.s32 %v542_v8, %v544_v10 }
  0x42   : > { %2063 = vset.pattern.permute.xlu1 %v3701_v44 }
  0x43   : > { %2073 = vset.pattern.permute.xlu0 %v3690_v22  ;;  %726 = vperm.xlu1 %2063, %v723_v43  }
  0x44   : > { %881 = vperm.xlu0 %2073, %v878_v23  }
  0x47   : > { %2065 = vset.pattern.permute.xlu1 %v3694_v46 }
  0x48   : > { %2074 = vset.pattern.permute.xlu0 %v3716_v24  ;;  %837 = vperm.xlu1 %2065, %v834_v45  }
  0x49   : > { %992 = vperm.xlu0 %2074, %v989_v25  }
  0x4c   : > { %2066 = vset.pattern.permute.xlu1 %v3693_v48 }
  0x4d   : > { %2076 = vset.pattern.permute.xlu0 %v3683_v26  ;;  %858 = vperm.xlu1 %2066, %v855_v47  }
  0x4e   : > { %1080 = vperm.xlu0 %2076, %v1077_v27  }
  0x51   : > { %2068 = vset.pattern.permute.xlu1 %v3718_v50 }
  0x52   : > { %2077 = vset.pattern.permute.xlu0 %v3713_v28  ;;  %969 = vperm.xlu1 %2068, %v966_v49   ;;  %v1343_v28 = vld [vmem:[%s3652_s8] sm:$0xf] }
  0x53   : > { %1103 = vperm.xlu0 %2077, %v1100_v29  }
  0x56   : > { %2069 = vset.pattern.permute.xlu1 %v3686_v52 }
  0x57   : > { %2079 = vset.pattern.permute.xlu0 %v2146_v32  ;;  %1015 = vperm.xlu1 %2069, %v1012_v51  }
  0x5b   : > { %2075 = vset.pattern.permute.xlu1 %v3684_v54 }
  0x5c   : > { %1059 = vperm.xlu1 %2075, %v1056_v53  }
  0x60   : > { %2078 = vset.pattern.permute.xlu1 %v3707_v1 }
  0x96   : > { %v442_v55 = vpop.permute.xlu0 %441 }
  0x9b   : > { %v2381_v27 = vpop.permute.xlu0 %682 }
  0xa0   : > { %v2383_v29 = vpop.permute.xlu0 %814 }
  0xa5   : > { %v2385_v30 = vpop.permute.xlu0 %615 }
  0xa6   : > { %3785 = vst [vmem:[#allocation6_spill] sm:$0xff] %v2385_v30  ;;  %v1717_v30 = vld [vmem:[%s3652_s8] sm:$0xf] }
  0xaa   : > { %v2387_v31 = vpop.permute.xlu0 %747 }
  0xaf   : > { %v2389_v32 = vpop.permute.xlu0 %948 }
  0xb0   : > { %3786 = vst [vmem:[#allocation7_spill] sm:$0xff] %v2389_v32  ;;  %v3822_v32 = vlaneseq }
  0xb4   : > { %v2391_v33 = vpop.permute.xlu0 %1036 }
  0xb5   : > { %3787 = vst [vmem:[#allocation8_spill] sm:$0xff] %v2391_v33  ;;  %v3829_v33 = vmov 0  }
  0xb9   : > { %v2393_v35 = vpop.permute.xlu0 %659 }
  0xba   : > { %3788 = vst [vmem:[#allocation9_spill] sm:$0xff] %v2393_v35  ;;  %v1379_v35 = vld [vmem:[%s3652_s8] sm:$0xf] }
  0xbe   : > { %v2395_v37 = vpop.permute.xlu0 %770 }
  0xbf   : > { %3789 = vst [vmem:[#allocation10_spill] sm:$0xff] %v2395_v37  ;;  %v1356_v37 = vld [vmem:[%s3652_s8] sm:$0xf] }
  0xc3   : > { %v2397_v39 = vpop.permute.xlu0 %881 }
  0xc4   : > { %3790 = vst [vmem:[#allocation11_spill] sm:$0xff] %v2397_v39  ;;  %v1399_v39 = vld [vmem:[%s3652_s8] sm:$0xf] }
  0xc8   : > { %v2399_v41 = vpop.permute.xlu0 %992 }
  0xc9   : > { %3791 = vst [vmem:[#allocation12_spill] sm:$0xff] %v2399_v41 }
  0xcd   : > { %v2401_v43 = vpop.permute.xlu0 %1080 }
  0xce   : > { %3792 = vst [vmem:[#allocation13_spill] sm:$0xff] %v2401_v43 }
  0xd2   : > { %v2403_v45 = vpop.permute.xlu0 %1103 }
  0xd3   : > { %3793 = vst [vmem:[#allocation14_spill] sm:$0xff] %v2403_v45 }
  0xee   : > { %v514_v56 = vpop.f32.mrb[0].mxu0 }
  0xef   : > { %v515_v57 = vadd.f32 %v514_v56, %v442_v55  ;;  %v516_v58 = vpop.f32.mrb[1].mxu0  ;;  %v2449_v56 = vpop.permute.xlu1 %563 }
  0xf0   : > { %v517_v59 = vadd.f32 %v516_v58, %v442_v55 }
  0xf1   : > { %v1976_v60 = vmul.f32 -1.442695, %v515_v57 }
  0xf2   : > { %v1977_v61 = vmul.f32 -1.442695, %v517_v59 }
  0xf3   : > { %2106 = vpow2.f32 %v1976_v60  ;;  %v2459_v58 = vpop.permute.xlu1 %584 }
  0xf4   : > { %2108 = vpow2.f32 %v1977_v61 }
  0xfd   : > { %v2107_v62 = vpop.eup %2106 }
  0xfe   : > { %v2109_v63 = vpop.eup %2108  ;;  %v525_v2 = vadd.f32 1.0, %v2107_v62 }
  0xff   : > { %v526_v3 = vadd.f32 1.0, %v2109_v63 }
 0x100   : > { %2110 = vrcp.f32 %v525_v2 }
 0x101   : > { %2112 = vrcp.f32 %v526_v3 }
 0x10a   : > { %v2111_v12 = vpop.eup %2110 }
 0x10b   : > { %v2113_v14 = vpop.eup %2112  ;;  %v2371_v16 = vmul.f32 %v2111_v12, %v515_v57 }
 0x10c   : > { %v2373_v18 = vmul.f32 %v2113_v14, %v517_v59  ;;  %v2469_v59 = vpop.permute.xlu1 %703 }
 0x10d   : > { %3783 = vst [vmem:[#allocation4_spill] sm:$0xff] %v2371_v16 }
 0x10e   : > { %3784 = vst [vmem:[#allocation5_spill] sm:$0xff] %v2373_v18  ;;  %v539_v23 = vcombine.low %v2371_v16, %v2373_v18 }
 0x110   : > { %v546_v25 = vrot.slane %v539_v23, %v2375_v20  ;;  %v2478_v62 = vpop.permute.xlu1 %793 }
 0x112   : > { %547 = vrot.lane.b32.xlu0 %v546_v25, %s3655_s25  ;;  %s3702_s25 = smov 93  }
 0x114   : > { %v2488_v63 = vpop.permute.xlu1 %904 }
 0x118   : > { %v2494_v2 = vpop.permute.xlu1 %925 }
 0x11c   : > { %v2504_v3 = vpop.permute.xlu1 %636 }
 0x120   : > { %v2510_v5 = vpop.permute.xlu1 %726 }
 0x124   : > { %v2520_v6 = vpop.permute.xlu1 %837 }
 0x125   : > { %3796 = vst [vmem:[#allocation15_spill] sm:$0xff] %v2520_v6 }
 0x128   : > { %v2526_v8 = vpop.permute.xlu1 %858 }
 0x12c   : > { %v2536_v10 = vpop.permute.xlu1 %969 }
 0x12d   : > { %3800 = vst [vmem:[#allocation16_spill] sm:$0xff] %v2536_v10  ;;  %v3821_v10 = vmov 19  }
 0x130   : > { %v2542_v12 = vpop.permute.xlu1 %1015 }
 0x131   : > { %3801 = vst [vmem:[#allocation17_spill] sm:$0xff] %v2542_v12  ;;  %v3818_v12 = vmov 18  }
 0x134   : > { %v2552_v14 = vpop.permute.xlu1 %1059 }
 0x135   : > { %3803 = vst [vmem:[#allocation18_spill] sm:$0xff] %v2552_v14 }
 0x184   : > { %v548_v47 = vpop.permute.xlu0 %547 }
 0x185   : > { %v549_v49 = vrot.slane %v548_v47, 6 }
 0x187   : > { %v551_v51 = vsel %vm3748_vm7, %v549_v49, %v548_v47  ;;  %vm890_vm7 = vcmask 752640  }
 0x188   : > { %558 = vst.msk [vmem:[#allocation2] sm:$0x3f] %vm557_vm8, %v551_v51  ;;  %vm735_vm8 = vcmask 900096  }
 0x18f   : > { %v559_v53 = vld [vmem:[#allocation2] sm:$0x3f] }
 0x190   : > { %v2407_v55 = vrot.slane %v559_v53, %v2375_v20  ;;  %v587_v60 = vcombine.high %v559_v53, %v559_v53 }
 0x192   : > { %706 = vrot.lane.b32.xlu0 %v2407_v55, %s3671_s26  ;;  %595 = vrot.lane.b32.xlu1 %v2407_v55, %s3673_s27  ;;  %v2453_v57 = vcombine.high %v2407_v55, %v2407_v55  ;;  %v2476_v61 = vrot.slane %v587_v60, %v2375_v20 }
 0x196   : > { %817 = vrot.lane.b32.xlu0 %v2407_v55, %s3675_s28  ;;  %685 = vrot.lane.b32.xlu1 %v2407_v55, %s3669_s29 }
 0x19a   : > { %928 = vrot.lane.b32.xlu0 %v2407_v55, %s3681_s30  ;;  %796 = vrot.lane.b32.xlu1 %v2407_v55, %s3677_s11 }
 0x19e   : > { %729 = vrot.lane.b32.xlu0 %v2407_v55, %s3732_s12  ;;  %907 = vrot.lane.b32.xlu1 %v2407_v55, %s3659_s15  ;;  %s3665_s15 = smov 62  }
 0x1a2   : > { %840 = vrot.lane.b32.xlu0 %v2407_v55, %s3704_s16  ;;  %618 = vrot.lane.b32.xlu1 %v2407_v55, %s3657_s18  ;;  %s3766_s18 = smov 77  }
 0x1a6   : > { %951 = vrot.lane.b32.xlu0 %v2407_v55, %s3691_s19  ;;  %639 = vrot.lane.b32.xlu1 %v2407_v55, %s3734_s20 }
 0x1aa   : > { %1018 = vrot.lane.b32.xlu0 %v2407_v55, %s3661_s21  ;;  %750 = vrot.lane.b32.xlu1 %v2407_v55, %s3709_s23  ;;  %s3765_s21 = smov 63  }
 0x1ae   : > { %662 = vrot.lane.b32.xlu0 %v2407_v55, %s3663_s24  ;;  %861 = vrot.lane.b32.xlu1 %v2407_v55, %s3702_s25  ;;  %s3679_s24 = smov 108  }
 0x1b2   : > { %884 = vrot.lane.b32.xlu0 %v2407_v55, %s3667_s17  ;;  %972 = vrot.lane.b32.xlu1 %v2407_v55, %s3766_s18  ;;  %s3727_s17 = smov 61  }
 0x1b6   : > { %1062 = vrot.lane.b32.xlu0 %v2407_v55, %s3665_s15  ;;  %1039 = vrot.lane.b32.xlu1 %v2407_v55, %s3765_s21  ;;  %s3711_s15 = smov 76  }
 0x1ba   : > { %773 = vrot.lane.b32.xlu1 %v2407_v55, %s3679_s24  ;;  %708 = vrot.lane.b32.xlu0 %v2453_v57, %s3671_s26 }
 0x1be   : > { %995 = vrot.lane.b32.xlu1 %v2407_v55, %s3711_s15  ;;  %819 = vrot.lane.b32.xlu0 %v2453_v57, %s3675_s28 }
 0x1c2   : > { %1083 = vrot.lane.b32.xlu1 %v2407_v55, %s3727_s17  ;;  %930 = vrot.lane.b32.xlu0 %v2453_v57, %s3681_s30 }
 0x1c6   : > { %641 = vrot.lane.b32.xlu0 %v2453_v57, %s3734_s20  ;;  %597 = vrot.lane.b32.xlu1 %v2453_v57, %s3673_s27 }
 0x1ca   : > { %731 = vrot.lane.b32.xlu0 %v2453_v57, %s3732_s12  ;;  %599 = vrot.lane.b32.xlu1 %v2476_v61, %s3673_s27  ;;  %s3797_s27 = smov 124  }
 0x1ce   : > { %752 = vrot.lane.b32.xlu0 %v2453_v57, %s3709_s23  ;;  %687 = vrot.lane.b32.xlu1 %v2453_v57, %s3669_s29 }
 0x1d2   : > { %842 = vrot.lane.b32.xlu0 %v2453_v57, %s3704_s16  ;;  %689 = vrot.lane.b32.xlu1 %v2476_v61, %s3669_s29  ;;  %s3794_s29 = smov 64  }
 0x1d6   : > { %863 = vrot.lane.b32.xlu0 %v2453_v57, %s3702_s25  ;;  %710 = vrot.lane.b32.xlu1 %v2476_v61, %s3671_s26  ;;  %s3795_s26 = smov 80  }
 0x1da   : > { %953 = vrot.lane.b32.xlu0 %v2453_v57, %s3691_s19  ;;  %798 = vrot.lane.b32.xlu1 %v2453_v57, %s3677_s11 }
 0x1de   : > { %974 = vrot.lane.b32.xlu0 %v2453_v57, %s3766_s18  ;;  %800 = vrot.lane.b32.xlu1 %v2476_v61, %s3677_s11  ;;  %s3799_s11 = smov 126  }
 0x1e2   : > { %1020 = vrot.lane.b32.xlu0 %v2453_v57, %s3794_s29  ;;  %821 = vrot.lane.b32.xlu1 %v2476_v61, %s3675_s28  ;;  %s3798_s28 = smov 92  }
 0x1e6   : > { %1041 = vrot.lane.b32.xlu0 %v2453_v57, %s3765_s21  ;;  %909 = vrot.lane.b32.xlu1 %v2453_v57, %s3795_s26 }
 0x1ea   : > { %664 = vrot.lane.b32.xlu0 %v2453_v57, %s3797_s27  ;;  %911 = vrot.lane.b32.xlu1 %v2476_v61, %s3795_s26 }
 0x1ee   : > { %775 = vrot.lane.b32.xlu0 %v2453_v57, %s3679_s24  ;;  %932 = vrot.lane.b32.xlu1 %v2476_v61, %s3681_s30  ;;  %s3802_s24 = smov 62   ;;  %s3729_s30 = smov 60  }
 0x1f2   : > { %886 = vrot.lane.b32.xlu0 %v2453_v57, %s3798_s28  ;;  %620 = vrot.lane.b32.xlu1 %v2453_v57, %s3799_s11 }
 0x1f6   : > { %997 = vrot.lane.b32.xlu0 %v2453_v57, %s3711_s15  ;;  %622 = vrot.lane.b32.xlu1 %v2476_v61, %s3799_s11 }
 0x1fa   : > { %1064 = vrot.lane.b32.xlu0 %v2453_v57, %s3802_s24  ;;  %643 = vrot.lane.b32.xlu1 %v2476_v61, %s3734_s20  ;;  %s3925_s20 = smov 110  }
 0x1fe   : > { %1085 = vrot.lane.b32.xlu0 %v2453_v57, %s3727_s17  ;;  %733 = vrot.lane.b32.xlu1 %v2476_v61, %s3732_s12  ;;  %s3924_s12 = smov 111  }
 0x202   : > { %1108 = vrot.lane.b32.xlu0 %v2453_v57, %s3729_s30  ;;  %754 = vrot.lane.b32.xlu1 %v2476_v61, %s3709_s23  ;;  %s3927_s23 = smov 109  }
 0x204   : > { %v2558_v20 = vpop.permute.xlu0 %706  ;;  %v2560_v23 = vpop.permute.xlu1 %595 }
 0x206   : > { %1106 = vrot.lane.b32.xlu0 %v2407_v55, %s3729_s30  ;;  %844 = vrot.lane.b32.xlu1 %v2476_v61, %s3704_s16  ;;  %s3912_s16 = sshll.u32 %s3990_s14, 4  ;;  %s3915_s14 = smov 34  }
 0x208   : > { %v2566_v25 = vpop.permute.xlu0 %817  ;;  %v2568_v47 = vpop.permute.xlu1 %685 }
 0x20a   : > { %865 = vrot.lane.b32.xlu1 %v2476_v61, %s3702_s25  ;;  %1359 = vperm.xlu0 %2079, %v1356_v37   ;;  %v3819_v37 = vmov 3   ;;  %s3928_s25 = smov 60  }
 0x20c   : > { %v2572_v49 = vpop.permute.xlu0 %928  ;;  %v2574_v51 = vpop.permute.xlu1 %796 }
 0x20e   : > { %955 = vrot.lane.b32.xlu1 %v2476_v61, %s3691_s19  ;;  %s3807_s19 = smov 108   ;;  %2096 = vset.pattern.permute.xlu0 %v3818_v12  ;;  %v363_v12 = vand.u32 127, %v3822_v32 }
 0x20f   : > { %1720 = vperm.xlu0 %2096, %v1717_v30   ;;  %v3824_v30 = vmov 4  }
 0x210   : > { %v2578_v53 = vpop.permute.xlu0 %729  ;;  %v2580_v60 = vpop.permute.xlu1 %907 }
 0x212   : > { %976 = vrot.lane.b32.xlu1 %v2476_v61, %s3766_s18 }
 0x213   : > { %2099 = vset.pattern.permute.xlu0 %v3821_v10  ;;  %v3826_v10 = vmov 24  }
 0x214   : > { %v2584_v26 = vpop.permute.xlu0 %840  ;;  %v2586_v54 = vpop.permute.xlu1 %618 }
 0x215   : > { %3804 = vst [vmem:[#allocation19_spill] sm:$0xff] %v2586_v54 }
 0x216   : > { %1022 = vrot.lane.b32.xlu1 %v2476_v61, %s3794_s29 }
 0x218   : > { %v2590_v17 = vpop.permute.xlu0 %951  ;;  %v2592_v52 = vpop.permute.xlu1 %639 }
 0x21a   : > { %1043 = vrot.lane.b32.xlu1 %v2476_v61, %s3765_s21 }
 0x21c   : > { %v2596_v15 = vpop.permute.xlu0 %1018  ;;  %v2598_v40 = vpop.permute.xlu1 %750 }
 0x21d   : > { %3805 = vst [vmem:[#allocation20_spill] sm:$0xff] %v2596_v15 }
 0x21e   : > { %666 = vrot.lane.b32.xlu1 %v2476_v61, %s3797_s27 }
 0x220   : > { %v2602_v38 = vpop.permute.xlu1 %861  ;;  %v2604_v22 = vpop.permute.xlu0 %662 }
 0x221   : > { %3806 = vst [vmem:[#allocation21_spill] sm:$0xff] %v2604_v22 }
 0x222   : > { %777 = vrot.lane.b32.xlu1 %v2476_v61, %s3807_s19 }
 0x224   : > { %v2608_v48 = vpop.permute.xlu1 %972  ;;  %v2612_v46 = vpop.permute.xlu0 %884 }
 0x225   : > { %3808 = vst [vmem:[#allocation22_spill] sm:$0xff] %v2612_v46 }
 0x226   : > { %888 = vrot.lane.b32.xlu1 %v2476_v61, %s3798_s28 }
 0x228   : > { %v2614_v9 = vpop.permute.xlu1 %1039  ;;  %v2620_v21 = vpop.permute.xlu0 %1062 }
 0x229   : > { %3810 = vst [vmem:[#allocation24_spill] sm:$0xff] %v2620_v21 }
 0x22a   : > { %999 = vrot.lane.b32.xlu1 %v2476_v61, %s3711_s15  ;;  %s3152_s15 = scalar_lea.vmem %s3654_s10, %s3912_s16  ;;  %s3926_s16 = smov 76  }
 0x22c   : > { %v2618_v36 = vpop.permute.xlu1 %773  ;;  %v2628_v0 = vpop.permute.xlu0 %708 }
 0x22d   : > { %3809 = vst [vmem:[#allocation23_spill] sm:$0xff] %v2618_v36 }
 0x22e   : > { %1066 = vrot.lane.b32.xlu1 %v2476_v61, %s3802_s24 }
 0x230   : > { %v2624_v13 = vpop.permute.xlu1 %995  ;;  %v2639_v7 = vpop.permute.xlu0 %819 }
 0x231   : > { %3811 = vst [vmem:[#allocation25_spill] sm:$0xff] %v2624_v13 }
 0x232   : > { %1087 = vrot.lane.b32.xlu1 %v2476_v61, %s3727_s17  ;;  %s3922_s17 = smov 125  }
 0x234   : > { %v2630_v44 = vpop.permute.xlu1 %1083  ;;  %v2646_v4 = vpop.permute.xlu0 %930 }
 0x235   : > { %3812 = vst [vmem:[#allocation26_spill] sm:$0xff] %v2630_v44 }
 0x236   : > { %1110 = vrot.lane.b32.xlu1 %v2476_v61, %s3729_s30  ;;  %s3923_s30 = smov 112  }
 0x238   : > { %v2637_v1 = vpop.permute.xlu1 %597  ;;  %v2653_v42 = vpop.permute.xlu0 %641 }
 0x23a   : > { %1134 = vperm.xlu1 %2078, %v1131_v34  }
 0x23c   : > { %v2644_v19 = vpop.permute.xlu1 %599  ;;  %v2657_v34 = vpop.permute.xlu0 %731 }
 0x23e   : > { %1346 = vperm.xlu1 %2078, %v1343_v28  }
 0x240   : > { %v2648_v24 = vpop.permute.xlu1 %687  ;;  %v2663_v45 = vpop.permute.xlu0 %752 }
 0x242   : > { %2080 = vset.pattern.permute.xlu1 %v2136_v11 }
 0x243   : > { %1382 = vperm.xlu1 %2080, %v1379_v35   ;;  %v1739_v35 = vld [vmem:[%s3652_s8] sm:$0xf] }
 0x244   : > { %v2651_v61 = vpop.permute.xlu1 %689  ;;  %v2667_v43 = vpop.permute.xlu0 %842  ;;  %1742 = vperm.xlu0 %2099, %v1739_v35   ;;  %v3828_v35 = vmov 5  }
 0x247   : > { %2081 = vset.pattern.permute.xlu1 %v3819_v37  ;;  %v1845_v37 = vld [vmem:[%s3652_s8] sm:$0xf] }
 0x248   : > { %v2655_v50 = vpop.permute.xlu1 %710  ;;  %v2673_v44 = vpop.permute.xlu0 %863  ;;  %1402 = vperm.xlu1 %2081, %v1399_v39   ;;  %2102 = vset.pattern.permute.xlu0 %v3826_v10  ;;  %v1463_v10 = vld [vmem:[%s3652_s8] sm:$0xf] }
 0x249   : > { %1848 = vperm.xlu0 %2102, %v1845_v37  }
 0x24c   : > { %v2659_v16 = vpop.permute.xlu1 %798  ;;  %v2677_v41 = vpop.permute.xlu0 %953  ;;  %2082 = vset.pattern.permute.xlu1 %v3824_v30 }
 0x24d   : > { %2103 = vset.pattern.permute.xlu0 %v3829_v33 }
 0x250   : > { %v2661_v18 = vpop.permute.xlu1 %800  ;;  %v2696_v22 = vpop.permute.xlu0 %974 }
 0x251   : > { %3813 = vst [vmem:[#allocation27_spill] sm:$0xff] %v2661_v18 }
 0x254   : > { %v2665_v28 = vpop.permute.xlu1 %821  ;;  %v2709_v54 = vpop.permute.xlu0 %1020 }
 0x255   : > { %3823 = vst [vmem:[#allocation33_spill] sm:$0xff] %v2709_v54 }
 0x258   : > { %v2669_v14 = vpop.permute.xlu1 %909  ;;  %v2724_v30 = vpop.permute.xlu0 %1041 }
 0x25c   : > { %v2671_v11 = vpop.permute.xlu1 %911 }
 0x25d   : > { %3814 = vst [vmem:[#allocation28_spill] sm:$0xff] %v2671_v11 }
 0x260   : > { %v2675_v21 = vpop.permute.xlu1 %932 }
 0x261   : > { %3815 = vst [vmem:[#allocation29_spill] sm:$0xff] %v2675_v21 }
 0x264   : > { %v2682_v13 = vpop.permute.xlu1 %620 }
 0x265   : > { %3816 = vst [vmem:[#allocation30_spill] sm:$0xff] %v2682_v13  ;;  %v1443_v13 = vld [vmem:[%s3652_s8] sm:$0xf] }
 0x268   : > { %v2693_v36 = vpop.permute.xlu1 %622 }
 0x269   : > { %3817 = vst [vmem:[#allocation31_spill] sm:$0xff] %v2693_v36  ;;  %v1421_v36 = vld [vmem:[%s3652_s8] sm:$0xf] }
 0x26a   : > { %1424 = vperm.xlu1 %2082, %v1421_v36   ;;  %v369_v36 = vand.u32 15, %v363_v12 }
 0x26c   : > { %v2702_v11 = vpop.permute.xlu1 %643  ;;  %v401_v15 = vadd.s32 4294967295, %v369_v36  ;;  %v413_v18 = vadd.s32 1, %v369_v36 }
 0x26d   : > { %3820 = vst [vmem:[#allocation32_spill] sm:$0xff] %v2702_v11  ;;  %v364_v11 = vadd.s32 128, %v363_v12  ;;  %v2736_v12 = vpop.permute.xlu0 %664 }
 0x26e   : > { %2083 = vset.pattern.permute.xlu1 %v3828_v35  ;;  %v389_v35 = vadd.s32 4294967294, %v369_v36  ;;  %3832 = vst [vmem:[#allocation37_spill] sm:$0xff] %v2736_v12  ;;  %vm403_vm13 = vcmp.ge.s32.totalorder %v401_v15, 0  ;;  %vm417_vm15 = vcmp.lt.s32.totalorder %v413_v18, 16 }
 0x26f   : > { %1446 = vperm.xlu1 %2083, %v1443_v13   ;;  %v376_v46 = vand.u32 15, %v364_v11  ;;  %v425_v11 = vadd.s32 2, %v369_v36  ;;  %v692_v36 = vsel %vm3749_vm9, %v2568_v47, %v2648_v24 }
 0x270   : > { %v2712_v39 = vpop.permute.xlu1 %733  ;;  %vm391_vm11 = vcmp.ge.s32.totalorder %v389_v35, 0 }
 0x271   : > { %3825 = vst [vmem:[#allocation34_spill] sm:$0xff] %v2712_v39  ;;  %v1315_v39 = vld [vmem:[%s3651_s7] sm:$0xf]  ;;  %v390_v21 = vadd.s32 4294967294, %v376_v46  ;;  %v402_v54 = vadd.s32 4294967295, %v376_v46  ;;  %v414_v13 = vadd.s32 1, %v376_v46  ;;  %v2762_v47 = vpop.permute.xlu0 %775 }
 0x272   : > { %1318 = vperm.xlu0 %2103, %v1315_v39   ;;  %v426_v39 = vadd.s32 2, %v376_v46  ;;  %vm429_vm1 = vcmp.lt.s32.totalorder %v425_v11, 16  ;;  %v578_v46 = vmul.f32 %v2453_v57, %v2449_v56 }
 0x273   : > { %vm392_vm12 = vcmp.ge.s32.totalorder %v390_v21, 0  ;;  %vm404_vm14 = vcmp.ge.s32.totalorder %v402_v54, 0  ;;  %vm418_vm0 = vcmp.lt.s32.totalorder %v414_v13, 16  ;;  %v713_v21 = vsel %vm3752_vm10, %v2558_v20, %v2628_v0 }
 0x274   : > { %v2721_v32 = vpop.permute.xlu1 %754  ;;  %vm430_vm2 = vcmp.lt.s32.totalorder %v426_v39, 16  ;;  %v717_v15 = vmul.f32 %v713_v21, %v2469_v59  ;;  %v602_v21 = vsel %vm3747_vm3, %v2560_v23, %v2637_v1  ;;  %v824_v23 = vsel %vm3753_vm4, %v2566_v25, %v2639_v7 }
 0x275   : > { %3827 = vst [vmem:[#allocation35_spill] sm:$0xff] %v2721_v32  ;;  %v3831_v32 = vmov 6   ;;  %v606_v25 = vmul.f32 %v602_v21, %v2459_v58 }
 0x276   : > { %2084 = vset.pattern.permute.xlu1 %v3831_v32  ;;  %v3834_v32 = vmov 7  }
 0x277   : > { %1466 = vperm.xlu1 %2084, %v1463_v10   ;;  %v577_v10 = vmul.f32 %v2407_v55, %v2449_v56  ;;  %v1505_v55 = vld [vmem:[%s3652_s8] sm:$0xf] }
 0x278   : > { %v2733_v37 = vpop.permute.xlu1 %844 }
 0x279   : > { %3830 = vst [vmem:[#allocation36_spill] sm:$0xff] %v2733_v37  ;;  %v1485_v37 = vld [vmem:[%s3652_s8] sm:$0xf] }
 0x27b   : > { %2085 = vset.pattern.permute.xlu1 %v3834_v32  ;;  %v3836_v32 = vmov 0.0  }
 0x27c   : > { %v2738_v33 = vpop.permute.xlu1 %865  ;;  %1488 = vperm.xlu1 %2085, %v1485_v37   ;;  %v2760_v12 = vsel %vm392_vm12, 1.0, %v3836_v32  ;;  %v2769_v56 = vsel %vm403_vm13, 1.0, %v3836_v32  ;;  %v2773_v57 = vsel %vm404_vm14, 1.0, %v3836_v32  ;;  %v2777_v20 = vsel %vm417_vm15, 1.0, %v3836_v32 }
 0x27d   : > { %3833 = vst [vmem:[#allocation38_spill] sm:$0xff] %v2738_v33  ;;  %v2757_v33 = vsel %vm391_vm11, 1.0, %v3836_v32  ;;  %3837 = vst [vmem:[#allocation40_spill] sm:$0xff] %v2769_v56  ;;  %v696_v37 = vmul.f32 %v692_v36, %v2381_v27  ;;  %v2782_v11 = vsel %vm418_vm0, 1.0, %v3836_v32  ;;  %v2785_v39 = vsel %vm429_vm1, 1.0, %v3836_v32 }
 0x27e   : > { %3838 = vst [vmem:[#allocation41_spill] sm:$0xff] %v2782_v11  ;;  %3839 = vst [vmem:[#allocation42_spill] sm:$0xff] %v2785_v39  ;;  %v2790_v54 = vsel %vm430_vm2, 1.0, %v3836_v32  ;;  %v2793_v18 = vmul.f32 %v2757_v33, %v577_v10  ;;  %v2796_v36 = vmul.f32 %v2760_v12, %v578_v46  ;;  %vm3760_vm11 = vcmask 785408   ;;  %v2811_v32 = vpop.permute.xlu0 %886 }
 0x27f   : > { %3841 = vst [vmem:[#allocation43_spill] sm:$0xff] %v2790_v54  ;;  %v603_v10 = vsel %vm3747_vm3, %v2637_v1, %v2644_v19  ;;  %vm3750_vm12 = vcmask 891904   ;;  %v698_v46 = vmul.f32 %v2757_v33, %v696_v37  ;;  %vm846_vm13 = vcmask 769024   ;;  %3842 = vst [vmem:[#allocation44_spill] sm:$0xff] %v2811_v32 }
 0x280   : > { %v2754_v35 = vpop.permute.xlu1 %955  ;;  %vm3751_vm14 = vcmask 760832   ;;  %vm3759_vm15 = vcmask 654336   ;;  %v935_v1 = vsel %vm3754_vm5, %v2572_v49, %v2646_v4  ;;  %v646_v19 = vsel %vm645_vm6, %v2592_v52, %v2653_v42 }
 0x281   : > { %3835 = vst [vmem:[#allocation39_spill] sm:$0xff] %v2754_v35  ;;  %v3840_v35 = vmov 8   ;;  %vm957_vm0 = vcmask 637952   ;;  %v803_v37 = vsel %vm3760_vm11, %v2574_v51, %v2659_v16  ;;  %vm3761_vm1 = vcmask 629760  }
 0x282   : > { %2086 = vset.pattern.permute.xlu1 %v3840_v35  ;;  %v1527_v35 = vld [vmem:[%s3652_s8] sm:$0xf]  ;;  %v3844_v54 = vmov 9   ;;  %v736_v49 = vsel %vm735_vm8, %v2578_v53, %v2657_v34  ;;  %v607_v11 = vmul.f32 %v603_v10, %v2459_v58  ;;  %v757_v52 = vsel %vm3750_vm12, %v2598_v40, %v2663_v45 }
 0x283   : > { %1508 = vperm.xlu1 %2086, %v1505_v55   ;;  %v719_v55 = vmul.f32 %v2769_v56, %v717_v15  ;;  %vm1024_vm2 = vcmask 523264   ;;  %vm3764_vm3 = vcmask 515072   ;;  %v939_v21 = vmul.f32 %v935_v1, %v2494_v2  ;;  %v1549_v40 = vld [vmem:[%s3652_s8] sm:$0xf] }
 0x284   : > { %v2798_v13 = vpop.permute.xlu1 %976  ;;  %v807_v53 = vmul.f32 %v803_v37, %v2478_v62  ;;  %v914_v58 = vsel %vm3759_vm15, %v2580_v60, %v2669_v14  ;;  %v650_v10 = vmul.f32 %v646_v19, %v2504_v3  ;;  %v609_v60 = vmul.f32 %v2773_v57, %v607_v11  ;;  %v2862_v19 = vpop.permute.xlu0 %997 }
 0x285   : > { %v721_v51 = vadd.f32 %v719_v55, %v698_v46  ;;  %v868_v46 = vsel %vm3751_vm14, %v2602_v38, %v2673_v44  ;;  %v608_v55 = vmul.f32 %v2769_v56, %v606_v25  ;;  %v714_v1 = vsel %vm3752_vm10, %v2628_v0, %v2655_v50 }
 0x286   : > { %vm779_vm12 = vcmask 883712   ;;  %v3845_v37 = vmov 10   ;;  %v847_v38 = vsel %vm846_vm13, %v2584_v26, %v2667_v43  ;;  %v918_v25 = vmul.f32 %v914_v58, %v2488_v63 }
 0x287   : > { %2087 = vset.pattern.permute.xlu1 %v3844_v54  ;;  %v828_v54 = vmul.f32 %v824_v23, %v2383_v29  ;;  %vm624_vm14 = vcmask 1031168   ;;  %v872_v11 = vmul.f32 %v868_v46, %v2526_v8  ;;  %v809_v0 = vmul.f32 %v2757_v33, %v807_v53 }
 0x288   : > { %v2825_v15 = vpop.permute.xlu1 %1022  ;;  %1530 = vperm.xlu1 %2087, %v1527_v35   ;;  %vm1001_vm10 = vcmask 621568   ;;  %v941_v50 = vmul.f32 %v2769_v56, %v939_v21  ;;  %v718_v26 = vmul.f32 %v714_v1, %v2469_v59  ;;  %v851_v58 = vmul.f32 %v847_v38, %v2520_v6  ;;  %v3850_v1 = vld [vmem:[#allocation33_spill] sm:$0xff] }
 0x289   : > { %3843 = vst [vmem:[#allocation45_spill] sm:$0xff] %v2825_v15  ;;  %v693_v15 = vsel %vm3749_vm9, %v2648_v24, %v2651_v61  ;;  %v740_v24 = vmul.f32 %v736_v49, %v2510_v5  ;;  %v761_v61 = vmul.f32 %v757_v52, %v2387_v31  ;;  %vm668_vm9 = vcmask 1014784   ;;  %v3852_v38 = vld [vmem:[#allocation29_spill] sm:$0xff] }
 0x28a   : > { %v697_v23 = vmul.f32 %v693_v15, %v2381_v27  ;;  %v830_v27 = vmul.f32 %v2769_v56, %v828_v54  ;;  %v2874_v15 = vmul.f32 %v2777_v20, %v650_v10  ;;  %v1569_v54 = vld [vmem:[%s3652_s8] sm:$0xf]  ;;  %v2887_v21 = vadd.f32 %v609_v60, %v2796_v36 }
 0x28b   : > { %v742_v49 = vadd.f32 %v740_v24, %v721_v51  ;;  %v763_v52 = vmul.f32 %v2777_v20, %v761_v61  ;;  %v825_v10 = vsel %vm3753_vm4, %v2639_v7, %v2665_v28  ;;  %v1046_v59 = vsel %vm3764_vm3, %v2614_v9, %v2724_v30  ;;  %v2906_v28 = vpop.permute.xlu0 %1064 }
 0x28c   : > { %v2854_v35 = vpop.permute.xlu1 %1043  ;;  %2088 = vset.pattern.permute.xlu1 %v3845_v37  ;;  %v699_v53 = vmul.f32 %v2760_v12, %v697_v23  ;;  %v920_v24 = vmul.f32 %v2757_v33, %v918_v25  ;;  %v3848_v46 = vmov 11   ;;  %v874_v23 = vmul.f32 %v2777_v20, %v872_v11  ;;  %v3851_v37 = vld [vmem:[#allocation20_spill] sm:$0xff] }
 0x28d   : > { %1552 = vperm.xlu1 %2088, %v1549_v40   ;;  %v610_v40 = vadd.f32 %v608_v55, %v2793_v18  ;;  %v2896_v61 = vadd.f32 %v763_v52, %v742_v49  ;;  %v958_v18 = vsel %vm957_vm0, %v2590_v17, %v2677_v41  ;;  %v832_v36 = vadd.f32 %v830_v27, %v809_v0  ;;  %v3849_v55 = vld [vmem:[#allocation27_spill] sm:$0xff]  ;;  %v3854_v27 = vld [vmem:[#allocation8_spill] sm:$0xff]  ;;  %v3855_v0 = vld [vmem:[#allocation22_spill] sm:$0xff] }
 0x28e   : > { %v979_v7 = vsel %vm3761_vm1, %v2608_v48, %v2696_v22  ;;  %v720_v9 = vmul.f32 %v2773_v57, %v718_v26  ;;  %v804_v60 = vsel %vm3760_vm11, %v2659_v16, %v3849_v55  ;;  %v1025_v49 = vsel %vm1024_vm2, %v3851_v37, %v3850_v1  ;;  %v3856_v16 = vld [vmem:[#allocation30_spill] sm:$0xff]  ;;  %v3857_v26 = vld [vmem:[#allocation19_spill] sm:$0xff]  ;;  %v3859_v37 = vld [vmem:[#allocation16_spill] sm:$0xff] }
 0x28f   : > { %3847 = vst [vmem:[#allocation47_spill] sm:$0xff] %v2896_v61  ;;  %v936_v17 = vsel %vm3754_vm5, %v2646_v4, %v3852_v38  ;;  %vm3763_vm4 = vcmask 506880   ;;  %v829_v48 = vmul.f32 %v825_v10, %v2383_v29  ;;  %v1050_v11 = vmul.f32 %v1046_v59, %v3854_v27  ;;  %v3858_v4 = vld [vmem:[#allocation7_spill] sm:$0xff]  ;;  %v3860_v29 = vld [vmem:[#allocation28_spill] sm:$0xff]  ;;  %v3862_v27 = vld [vmem:[#allocation21_spill] sm:$0xff] }
 0x290   : > { %v2878_v51 = vpop.permute.xlu1 %666  ;;  %v891_v52 = vsel %vm890_vm7, %v3855_v0, %v2811_v32  ;;  %v962_v55 = vmul.f32 %v958_v18, %v3858_v4  ;;  %v983_v38 = vmul.f32 %v979_v7, %v3859_v37  ;;  %v943_v61 = vadd.f32 %v941_v50, %v920_v24  ;;  %v3864_v18 = vld [vmem:[#allocation17_spill] sm:$0xff]  ;;  %v3865_v50 = vld [vmem:[#allocation23_spill] sm:$0xff] }
 0x291   : > { %3846 = vst [vmem:[#allocation46_spill] sm:$0xff] %v2878_v51  ;;  %2089 = vset.pattern.permute.xlu1 %v3848_v46  ;;  %v1591_v46 = vld [vmem:[%s3652_s8] sm:$0xf]  ;;  %v915_v10 = vsel %vm3759_vm15, %v2669_v14, %v3860_v29  ;;  %vm1089_vm5 = vcmask 498688   ;;  %v853_v59 = vadd.f32 %v851_v58, %v832_v36  ;;  %v808_v0 = vmul.f32 %v804_v60, %v2478_v62  ;;  %v3866_v7 = vld [vmem:[#allocation11_spill] sm:$0xff] }
 0x292   : > { %1572 = vperm.xlu1 %2089, %v1569_v54   ;;  %v625_v54 = vsel %vm624_vm14, %v3857_v26, %v3856_v16  ;;  %v3861_v51 = vld [vmem:[#allocation37_spill] sm:$0xff]  ;;  %v940_v6 = vmul.f32 %v936_v17, %v2494_v2  ;;  %v3863_v32 = vmov 12   ;;  %v780_v24 = vsel %vm779_vm12, %v3865_v50, %v2762_v47  ;;  %v3867_v29 = vld [vmem:[#allocation6_spill] sm:$0xff] }
 0x293   : > { %v669_v26 = vsel %vm668_vm9, %v3862_v27, %v3861_v51  ;;  %v895_v14 = vmul.f32 %v891_v52, %v3866_v7  ;;  %v629_v58 = vmul.f32 %v625_v54, %v3867_v29  ;;  %v831_v62 = vmul.f32 %v2773_v57, %v829_v48  ;;  %v3868_v27 = vld [vmem:[#allocation9_spill] sm:$0xff]  ;;  %v3870_v7 = vld [vmem:[#allocation31_spill] sm:$0xff] }
 0x294   : > { %v2918_v25 = vpop.permute.xlu1 %777  ;;  %v1052_v60 = vmul.f32 %v2769_v56, %v1050_v11  ;;  %v919_v2 = vmul.f32 %v915_v10, %v2488_v63  ;;  %v964_v17 = vadd.f32 %v962_v55, %v943_v61  ;;  %v673_v50 = vmul.f32 %v669_v26, %v3868_v27  ;;  %v3869_v52 = vld [vmem:[#allocation25_spill] sm:$0xff]  ;;  %v3873_v27 = vld [vmem:[#allocation12_spill] sm:$0xff] }
 0x295   : > { %3853 = vst [vmem:[#allocation27_spill] sm:$0xff] %v2918_v25  ;;  %v1029_v25 = vmul.f32 %v1025_v49, %v3864_v18  ;;  %v2955_v49 = vadd.f32 %v720_v9, %v699_v53  ;;  %v1002_v54 = vsel %vm1001_vm10, %v3869_v52, %v2862_v19  ;;  %v1611_v48 = vld [vmem:[%s3652_s8] sm:$0xf]  ;;  %v985_v63 = vmul.f32 %v2777_v20, %v983_v38 }
 0x296   : > { %2090 = vset.pattern.permute.xlu1 %v3863_v32  ;;  %v2953_v32 = vpop.permute.xlu0 %1085  ;;  %v810_v53 = vmul.f32 %v2760_v12, %v808_v0  ;;  %v3871_v9 = vld [vmem:[#allocation10_spill] sm:$0xff]  ;;  %v942_v11 = vmul.f32 %v2773_v57, %v940_v6  ;;  %v876_v10 = vadd.f32 %v874_v23, %v853_v59  ;;  %v897_v26 = vmul.f32 %v2785_v39, %v895_v14  ;;  %v3874_v0 = vld [vmem:[#allocation32_spill] sm:$0xff] }
 0x297   : > { %1594 = vperm.xlu1 %2090, %v1591_v46   ;;  %v626_v46 = vsel %vm624_vm14, %v3856_v16, %v3870_v7  ;;  %v784_v61 = vmul.f32 %v780_v24, %v3871_v9  ;;  %v1031_v55 = vmul.f32 %v2757_v33, %v1029_v25  ;;  %v631_v52 = vadd.f32 %v629_v58, %v610_v40  ;;  %v3875_v14 = vld [vmem:[#allocation24_spill] sm:$0xff]  ;;  %v3876_v58 = vld [vmem:[#allocation34_spill] sm:$0xff] }
 0x298   : > { %v2948_v36 = vpop.permute.xlu1 %888  ;;  %v3872_v16 = vmov 13   ;;  %v921_v7 = vmul.f32 %v2760_v12, %v919_v2  ;;  %v1006_v51 = vmul.f32 %v1002_v54, %v3873_v27  ;;  %v630_v38 = vmul.f32 %v626_v46, %v3867_v29 }
 0x299   : > { %v647_v24 = vsel %vm645_vm6, %v2653_v42, %v3874_v0  ;;  %vm3762_vm15 = vcmask 490496   ;;  %v2981_v6 = vmul.f32 %v2785_v39, %v673_v50  ;;  %v2983_v23 = vadd.f32 %v985_v63, %v964_v17  ;;  %v1633_v17 = vld [vmem:[%s3652_s8] sm:$0xf] }
 0x29a   : > { %v2985_v40 = vadd.f32 %v1052_v60, %v1031_v55  ;;  %v833_v25 = vadd.f32 %v831_v62, %v810_v53  ;;  %v2988_v59 = vmul.f32 %v2785_v39, %v784_v61  ;;  %v1069_v29 = vsel %vm3763_vm4, %v3875_v14, %v2906_v28  ;;  %v1109_v2 = vpop.permute.xlu0 %1108  ;;  %v3877_v53 = vld [vmem:[#allocation26_spill] sm:$0xff]  ;;  %v3887_v0 = vld [vmem:[#allocation13_spill] sm:$0xff] }
 0x29b   : > { %2091 = vset.pattern.permute.xlu1 %v3872_v16  ;;  %v737_v42 = vsel %vm735_vm8, %v2657_v34, %v3876_v58  ;;  %v944_v54 = vadd.f32 %v942_v11, %v921_v7  ;;  %v2999_v60 = vadd.f32 %v897_v26, %v876_v10  ;;  %v3002_v62 = vadd.f32 %v2874_v15, %v631_v52  ;;  %v3878_v11 = vld [vmem:[#allocation35_spill] sm:$0xff]  ;;  %v3885_v52 = vld [vmem:[#allocation36_spill] sm:$0xff]  ;;  %v3888_v14 = vld [vmem:[#allocation45_spill] sm:$0xff] }
 0x29c   : > { %v1000_v56 = vpop.permute.xlu1 %999  ;;  %1614 = vperm.xlu1 %2091, %v1611_v48   ;;  %v651_v50 = vmul.f32 %v647_v24, %v2504_v3  ;;  %v980_v46 = vsel %vm3761_vm1, %v2696_v22, %v2798_v13  ;;  %v1008_v34 = vmul.f32 %v2785_v39, %v1006_v51  ;;  %v3010_v63 = vadd.f32 %v630_v38, %v2887_v21  ;;  %v3881_v3 = vld [vmem:[#allocation18_spill] sm:$0xff]  ;;  %v3884_v21 = vld [vmem:[#allocation39_spill] sm:$0xff]  ;;  %v3886_v38 = vld [vmem:[#allocation41_spill] sm:$0xff] }
 0x29d   : > { %v1090_v61 = vsel %vm1089_vm5, %v3877_v53, %v2953_v32  ;;  %vm3879_vm11 = vcmask 891904   ;;  %v3880_v55 = vmov 14   ;;  %v3020_v10 = vmul.f32 %v1069_v29, %v3881_v3  ;;  %v3882_v13 = vld [vmem:[#allocation38_spill] sm:$0xff] }
 0x29e   : > { %v758_v15 = vsel %vm3879_vm11, %v2663_v45, %v3878_v11  ;;  %v741_v22 = vmul.f32 %v737_v42, %v2510_v5  ;;  %vm3883_vm1 = vcmask 760832   ;;  %v959_v26 = vsel %vm957_vm0, %v2677_v41, %v3884_v21  ;;  %v1107_v58 = vpop.permute.xlu0 %1106 }
 0x29f   : > { %v869_v51 = vsel %vm3883_vm1, %v2673_v44, %v3882_v13  ;;  %v848_v45 = vsel %vm846_vm13, %v2667_v43, %v3885_v52  ;;  %v984_v16 = vmul.f32 %v980_v46, %v3859_v37  ;;  %v1047_v7 = vsel %vm3764_vm3, %v2724_v30, %v2854_v35  ;;  %v1655_v37 = vld [vmem:[%s3652_s8] sm:$0xf]  ;;  %v3889_v35 = vld [vmem:[#allocation27_spill] sm:$0xff]  ;;  %v3892_v46 = vld [vmem:[#allocation8_spill] sm:$0xff] }
 0x2a0   : > { %v1067_v48 = vpop.permute.xlu1 %1066  ;;  %2092 = vset.pattern.permute.xlu1 %v3880_v55  ;;  %v1003_v5 = vsel %vm1001_vm10, %v2862_v19, %v1000_v56  ;;  %v653_v44 = vmul.f32 %v3886_v38, %v651_v50  ;;  %v1094_v24 = vmul.f32 %v1090_v61, %v3887_v0  ;;  %v762_v41 = vmul.f32 %v758_v15, %v2387_v31  ;;  %v3890_v31 = vld [vmem:[#allocation44_spill] sm:$0xff]  ;;  %v3894_v15 = vld [vmem:[#allocation46_spill] sm:$0xff]  ;;  %v3896_v13 = vld [vmem:[#allocation11_spill] sm:$0xff] }
 0x2a1   : > { %1636 = vperm.xlu1 %2092, %v1633_v17   ;;  %v1026_v29 = vsel %vm1024_vm2, %v3850_v1, %v3888_v14  ;;  %v873_v30 = vmul.f32 %v869_v51, %v2526_v8  ;;  %v963_v56 = vmul.f32 %v959_v26, %v3858_v4  ;;  %v781_v19 = vsel %vm779_vm12, %v2762_v47, %v3889_v35  ;;  %v3891_v17 = vld [vmem:[#allocation15_spill] sm:$0xff]  ;;  %v3895_v47 = vld [vmem:[#allocation37_spill] sm:$0xff] }
 0x2a2   : > { %v892_v42 = vsel %vm890_vm7, %v3890_v31, %v2948_v36  ;;  %v743_v1 = vadd.f32 %v741_v22, %v2955_v49  ;;  %v852_v50 = vmul.f32 %v848_v45, %v3891_v17  ;;  %v1051_v53 = vmul.f32 %v1047_v7, %v3892_v46  ;;  %v3897_v7 = vld [vmem:[#allocation9_spill] sm:$0xff] }
 0x2a3   : > { %v1007_v61 = vmul.f32 %v1003_v5, %v3873_v27  ;;  %v3893_v11 = vmov 15   ;;  %v986_v8 = vmul.f32 %v3886_v38, %v984_v16  ;;  %v1030_v4 = vmul.f32 %v1026_v29, %v3864_v18  ;;  %v3899_v29 = vld [vmem:[#allocation14_spill] sm:$0xff] }
 0x2a4   : > { %v1088_v43 = vpop.permute.xlu1 %1087  ;;  %v670_v55 = vsel %vm668_vm9, %v3895_v47, %v3894_v15  ;;  %v764_v49 = vmul.f32 %v3886_v38, %v762_v41  ;;  %v1113_v22 = vsel %vm3762_vm15, %v1107_v58, %v1109_v2  ;;  %v785_v27 = vmul.f32 %v781_v19, %v3871_v9  ;;  %v3898_v9 = vld [vmem:[#allocation43_spill] sm:$0xff]  ;;  %v1697_v46 = vld [vmem:[%s3652_s8] sm:$0xf] }
 0x2a5   : > { %2093 = vset.pattern.permute.xlu1 %v3893_v11  ;;  %v1091_v36 = vsel %vm1089_vm5, %v2953_v32, %v1088_v43  ;;  %v896_v51 = vmul.f32 %v892_v42, %v3896_v13  ;;  %v875_v26 = vmul.f32 %v3886_v38, %v873_v30  ;;  %v965_v18 = vadd.f32 %v963_v56, %v944_v54  ;;  %v1675_v32 = vld [vmem:[%s3652_s8] sm:$0xf] }
 0x2a6   : > { %1658 = vperm.xlu1 %2093, %v1655_v37   ;;  %v1070_v52 = vsel %vm3763_vm4, %v2906_v28, %v1067_v48  ;;  %v1053_v16 = vmul.f32 %v2773_v57, %v1051_v53  ;;  %v674_v5 = vmul.f32 %v670_v55, %v3897_v7  ;;  %v1009_v41 = vmul.f32 %v3898_v9, %v1007_v61 }
 0x2a7   : > { %v1095_v14 = vmul.f32 %v1091_v36, %v3887_v0  ;;  %v1117_v43 = vmul.f32 %v1113_v22, %v3899_v29  ;;  %v854_v54 = vadd.f32 %v852_v50, %v833_v25  ;;  %v988_v37 = vadd.f32 %v986_v8, %v965_v18 }
 0x2a8   : > { %v1111_v21 = vpop.permute.xlu1 %1110  ;;  %v1032_v28 = vmul.f32 %v2760_v12, %v1030_v4  ;;  %v3900_v48 = vmov 16   ;;  %v898_v58 = vmul.f32 %v3898_v9, %v896_v51  ;;  %v1074_v30 = vmul.f32 %v1070_v52, %v3881_v3  ;;  %v3902_v4 = vld [vmem:[#allocation47_spill] sm:$0xff]  ;;  %v1781_v51 = vld [vmem:[%s3652_s8] sm:$0xf] }
 0x2a9   : > { %v1114_v45 = vsel %vm3762_vm15, %v1109_v2, %v1111_v21  ;;  %v787_v2 = vmul.f32 %v3898_v9, %v785_v27  ;;  %v1010_v35 = vadd.f32 %v1008_v34, %v2983_v23  ;;  %v1096_v0 = vmul.f32 %v2777_v20, %v1094_v24 }
 0x2aa   : > { %2094 = vset.pattern.permute.xlu1 %v3900_v48  ;;  %v1118_v56 = vmul.f32 %v1114_v45, %v3899_v29  ;;  %v766_v19 = vadd.f32 %v764_v49, %v743_v1  ;;  %v877_v25 = vadd.f32 %v875_v26, %v854_v54  ;;  %v676_v31 = vmul.f32 %v3898_v9, %v674_v5  ;;  %v1823_v5 = vld [vmem:[%s3652_s8] sm:$0xf] }
 0x2ab   : > { %1678 = vperm.xlu1 %2094, %v1675_v32   ;;  %v1011_v42 = vadd.f32 %v1009_v41, %v988_v37  ;;  %v1055_v17 = vadd.f32 %v1053_v16, %v1032_v28  ;;  %v1097_v50 = vmul.f32 %v3886_v38, %v1095_v14  ;;  %v677_v3 = vadd.f32 %v2981_v6, %v3002_v62  ;;  %v1803_v16 = vld [vmem:[%s3652_s8] sm:$0xf] }
 0x2ac   : > { %v1075_v23 = vadd.f32 %v3020_v10, %v2985_v40  ;;  %v655_v34 = vadd.f32 %v653_v44, %v3010_v63  ;;  %v1119_v24 = vmul.f32 %v2785_v39, %v1117_v43  ;;  %v789_v1 = vadd.f32 %v787_v2, %v766_v19  ;;  %v1761_v63 = vld [vmem:[%s3652_s8] sm:$0xf]  ;;  %v3135_v19 = vpop.permute.xlu0 %1359 }
 0x2ad   : > { %v900_v53 = vadd.f32 %v898_v58, %v877_v25  ;;  %v1076_v61 = vadd.f32 %v1074_v30, %v1055_v17  ;;  %v1120_v11 = vmul.f32 %v3898_v9, %v1118_v56  ;;  %v3901_v8 = vmov 17   ;;  %v1154_v58 = vld [vmem:[%s3650_s6] sm:$0xf]  ;;  %v3908_v56 = vld [vmem:[#allocation4_spill] sm:$0xff] }
 0x2ae   : > { %v788_v15 = vadd.f32 %v2988_v59, %v3902_v4  ;;  %v1125_v47 = vadd.f32 %v1010_v35, %v2999_v60  ;;  %v1098_v6 = vadd.f32 %v1096_v0, %v1075_v23  ;;  %v678_v62 = vadd.f32 %v676_v31, %v655_v34  ;;  %v3907_v30 = vld [vmem:[#allocation5_spill] sm:$0xff] }
 0x2af   : > { %2095 = vset.pattern.permute.xlu1 %v3901_v8  ;;  %v1126_v40 = vadd.f32 %v1011_v42, %v900_v53  ;;  %v1099_v10 = vadd.f32 %v1097_v50, %v1076_v61  ;;  %v3903_v22 = vmov 20   ;;  %v3904_v52 = vmov 21   ;;  %v1153_v0 = vld [vmem:[%s3649_s5] sm:$0xf] }
 0x2b0   : > { %1700 = vperm.xlu1 %2095, %v1697_v46   ;;  %v1121_v44 = vadd.f32 %v1119_v24, %v1098_v6  ;;  %v1124_v55 = vadd.f32 %v789_v1, %v678_v62  ;;  %v1123_v49 = vadd.f32 %v788_v15, %v677_v3  ;;  %v3905_v7 = vmov 22   ;;  %v3137_v25 = vpop.permute.xlu0 %1720  ;;  %v3155_v1 = vld [vmem:[%s2265_s22] sm:$0xff] }
 0x2b1   : > { %v1122_v36 = vadd.f32 %v1120_v11, %v1099_v10  ;;  %v3906_v41 = vmov 23   ;;  %vm1159_vm11 = vcmask 1041408   ;;  %vm1155_vm1 = vcmask 15360   ;;  %3910 = vst [vmem:[#allocation33_spill] sm:$0xff] %v3137_v25  ;;  %3913 = vst [vmem:[#allocation29_spill] sm:$0xff] %v3155_v1  ;;  %v3159_v11 = vld [vmem:[%s2265_s22 + $0x8] sm:$0xff] }
 0x2b2   : > { %v1127_v27 = vadd.f32 %v1125_v47, %v1123_v49  ;;  %v1128_v13 = vadd.f32 %v1126_v40, %v1124_v55  ;;  %v3909_v35 = vmov 0.0   ;;  %vm1323_vm15 = vcmask 273408   ;;  %3914 = vst [vmem:[#allocation22_spill] sm:$0xff] %v3159_v11  ;;  %s3921_s22 = smov 127  }
 0x2b3   : > { %vm1325_vm4 = vcmask 552208   ;;  %1324 = vst.msk [vmem:[#allocation3] sm:$0xf] %vm1323_vm15, %v3909_v35  ;;  %vm3920_vm3 = vcmask 277504  }
 0x2b4   : > { %2097 = vset.pattern.permute.xlu1 %v3903_v22  ;;  %v1129_v59 = vadd.f32 %v1127_v27, %v1121_v44  ;;  %v1130_v60 = vadd.f32 %v1128_v13, %v1122_v36  ;;  %1326 = vst.msk [vmem:[#allocation3 + $0x8] sm:$0xf] %vm1325_vm4, %v3909_v35  ;;  %vm1336_vm4 = vcmask 1043728  }
 0x2b5   : > { %1764 = vperm.xlu1 %2097, %v1761_v63  }
 0x2b9   : > { %v1135_v21 = vpop.permute.xlu1 %1134  ;;  %2098 = vset.pattern.permute.xlu1 %v3904_v52 }
 0x2ba   : > { %v1137_v26 = vadd.f32 %v1135_v21, %v1129_v59  ;;  %v1138_v18 = vadd.f32 %v1135_v21, %v1130_v60  ;;  %1784 = vperm.xlu1 %2098, %v1781_v51  }
 0x2bc   : > { %v1978_v45 = vmul.f32 -1.442695, %v1137_v26  ;;  %v1979_v32 = vmul.f32 -1.442695, %v1138_v18 }
 0x2bd   : > { %v3143_v17 = vpop.permute.xlu1 %1346 }
 0x2be   : > { %2114 = vpow2.f32 %v1978_v45  ;;  %2100 = vset.pattern.permute.xlu1 %v3905_v7 }
 0x2bf   : > { %2116 = vpow2.f32 %v1979_v32  ;;  %1806 = vperm.xlu1 %2100, %v1803_v16  }
 0x2c2   : > { %v3145_v3 = vpop.permute.xlu1 %1382 }
 0x2c3   : > { %2101 = vset.pattern.permute.xlu1 %v3906_v41  ;;  %v3139_v31 = vpop.permute.xlu0 %1742 }
 0x2c4   : > { %1826 = vperm.xlu1 %2101, %v1823_v5  }
 0x2c7   : > { %v3165_v4 = vpop.permute.xlu1 %1402 }
 0x2c8   : > { %v2115_v14 = vpop.eup %2114  ;;  %v3141_v42 = vpop.permute.xlu0 %1848 }
 0x2c9   : > { %v2117_v29 = vpop.eup %2116  ;;  %v1145_v43 = vadd.f32 1.0, %v2115_v14  ;;  %3911 = vst [vmem:[#allocation20_spill] sm:$0xff] %v3141_v42 }
 0x2ca   : > { %v1146_v54 = vadd.f32 1.0, %v2117_v29 }
 0x2cb   : > { %2118 = vrcp.f32 %v1145_v43 }
 0x2cc   : > { %2120 = vrcp.f32 %v1146_v54 }
 0x2d5   : > { %v2119_v37 = vpop.eup %2118 }
 0x2d6   : > { %v2121_v28 = vpop.eup %2120  ;;  %v1151_v48 = vmul.f32 %v2119_v37, %v1137_v26 }
 0x2d7   : > { %v1152_v2 = vmul.f32 %v2121_v28, %v1138_v18 }
 0x2d9   : > { %1980 = vmatprep.subr.msk.mxu1 %vm1159_vm11, %v1152_v2 }
 0x2da   : > { %1981 = vmatpush1.msk.msra.mxu1 %vm1159_vm11, %v1151_v48 }
 0x2db   : > { %1982 = vmatmul.mubr.msk.f32.vlgmr.msra.gmra.mrb[0].mxu1 %vm1155_vm1, %v1154_v58  ;;  %1983 = vmatprep.subr.msk.mxu1 %vm1159_vm11, %v3907_v30 }
 0x2dc   : > { %1984 = vmatpush1.msk.msra.mxu1 %vm1159_vm11, %v3908_v56  ;;  %1308 = vmatprep.mubr.f32.mxu1 %v3909_v35  ;;  %vm1337_vm11 = vcmask 1047556  }
 0x2e3   : > { %1985 = vmatmul.mubr.msk.f32.vlgmr.msra.gmra.mrb[0].mxu1 %vm1155_vm1, %v1153_v0  ;;  %vm1338_vm1 = vmor %vm1337_vm11, %vm1336_vm4  ;;  %vm3946_vm4 = vcmask 916480   ;;  %vm3947_vm11 = vcmask 908288  }
 0x2e9   : > { %v3167_v15 = vpop.permute.xlu1 %1424 }
 0x2ee   : > { %v3169_v47 = vpop.permute.xlu1 %1446 }
 0x2f1   : > { %v1319_v50 = vpop.permute.xlu0 %1318 }
 0x2f6   : > { %v3171_v6 = vpop.permute.xlu1 %1466 }
 0x2fb   : > { %v3173_v62 = vpop.permute.xlu1 %1488 }
 0x302   : > { %v3175_v40 = vpop.permute.xlu1 %1508 }
 0x307   : > { %v3177_v10 = vpop.permute.xlu1 %1530 }
 0x30c   : > { %v3179_v63 = vpop.permute.xlu1 %1552 }
 0x311   : > { %v3181_v44 = vpop.permute.xlu1 %1572 }
 0x316   : > { %v3183_v55 = vpop.permute.xlu1 %1594 }
 0x31b   : > { %v3185_v36 = vpop.permute.xlu1 %1614 }
 0x320   : > { %v3187_v49 = vpop.permute.xlu1 %1636 }
 0x321   : > { %3916 = vst [vmem:[#allocation30_spill] sm:$0xff] %v3187_v49 }
 0x325   : > { %v3189_v22 = vpop.permute.xlu1 %1658 }
 0x32a   : > { %v3191_v27 = vpop.permute.xlu1 %1678 }
 0x32f   : > { %v3193_v13 = vpop.permute.xlu1 %1700 }
 0x334   : > { %v3195_v59 = vpop.permute.xlu1 %1764 }
 0x339   : > { %v3197_v60 = vpop.permute.xlu1 %1784 }
 0x33a   : > { %3917 = vst [vmem:[#allocation19_spill] sm:$0xff] %v3197_v60 }
 0x33e   : > { %v3199_v51 = vpop.permute.xlu1 %1806 }
 0x33f   : > { %3918 = vst [vmem:[#allocation7_spill] sm:$0xff] %v3199_v51 }
 0x343   : > { %v3201_v21 = vpop.permute.xlu1 %1826 }
 0x344   : > { %3919 = vst [vmem:[#allocation16_spill] sm:$0xff] %v3201_v21 }
 0x3b6   : > { %v1310_v46 = vpop.f32.mrb[0].mxu1 }
 0x3b7   : > { %v1321_v23 = vadd.f32 %v1319_v50, %v1310_v46  ;;  %v1312_v34 = vpop.f32.mrb[1].mxu1 }
 0x3b8   : > { %v1322_v24 = vadd.f32 %v1319_v50, %v1312_v34 }
 0x3b9   : > { %v1883_v53 = vadd.f32 %v3155_v1, %v1321_v23 }
 0x3ba   : > { %v1329_v61 = vcombine.low %v1321_v23, %v1322_v24  ;;  %v1884_v8 = vadd.f32 %v3159_v11, %v1322_v24 }
 0x3bb   : > { %1885 = vst [vmem:[%s3152_s15] sm:$0xf] %v1883_v53 }
 0x3bc   : > { %1886 = vst [vmem:[%s3152_s15 + $0x8] sm:$0xf] %v1884_v8  ;;  %1330 = vrot.lane.b32.xlu1 %v1329_v61, %s3915_s14  ;;  %s3929_s14 = smov 96  }
 0x42e   : > { %v1331_v26 = vpop.permute.xlu1 %1330 }
 0x42f   : > { %v1332_v18 = vrot.slane %v1331_v26, 4 }
 0x431   : > { %v1333_v52 = vsel %vm3920_vm3, %v1332_v18, %v1331_v26  ;;  %1340 = vst.msk [vmem:[#allocation3 + $0x8] sm:$0xf] %vm1323_vm15, %v1332_v18  ;;  %vm3942_vm3 = vcmask 1039360  }
 0x432   : > { %1339 = vst.msk [vmem:[#allocation3] sm:$0xff] %vm1338_vm1, %v1333_v52  ;;  %vm3943_vm15 = vmmov %vm3942_vm3  ;;  %vm3948_vm1 = vcmask 891904  }
 0x438   : > { %v3205_v45 = vld [vmem:[#allocation3 + $0x8] sm:$0xf] }
 0x439   : > { %1727 = vrot.lane.b32.xlu1 %v3205_v45, %s3766_s18  ;;  %1367 = vrot.lane.b32.xlu0 %v3205_v45, %s3921_s22  ;;  %v3219_v32 = vld [vmem:[#allocation3] sm:$0xff] }
 0x43a   : > { %v3247_v16 = vcombine.high %v3219_v32, %v3219_v32 }
 0x43c   : > { %v1353_v24 = vmul.f32 %v3247_v16, %v3143_v17 }
 0x43d   : > { %1791 = vrot.lane.b32.xlu1 %v3205_v45, %s3765_s21  ;;  %1389 = vrot.lane.b32.xlu0 %v3205_v45, %s3799_s11 }
 0x441   : > { %1813 = vrot.lane.b32.xlu1 %v3205_v45, %s3802_s24  ;;  %1409 = vrot.lane.b32.xlu0 %v3205_v45, %s3922_s17 }
 0x445   : > { %1431 = vrot.lane.b32.xlu0 %v3205_v45, %s3797_s27  ;;  %1363 = vrot.lane.b32.xlu1 %v3219_v32, %s3921_s22 }
 0x449   : > { %1453 = vrot.lane.b32.xlu0 %v3205_v45, %s3923_s30  ;;  %1723 = vrot.lane.b32.xlu1 %v3219_v32, %s3766_s18  ;;  %s3931_s18 = smov 94  }
 0x44d   : > { %1473 = vrot.lane.b32.xlu0 %v3205_v45, %s3924_s12  ;;  %1787 = vrot.lane.b32.xlu1 %v3219_v32, %s3765_s21  ;;  %s3930_s21 = smov 95  }
 0x451   : > { %1495 = vrot.lane.b32.xlu0 %v3205_v45, %s3925_s20  ;;  %1745 = vrot.lane.b32.xlu1 %v3219_v32, %s3926_s16 }
 0x455   : > { %1515 = vrot.lane.b32.xlu0 %v3205_v45, %s3927_s23  ;;  %1809 = vrot.lane.b32.xlu1 %v3219_v32, %s3802_s24 }
 0x459   : > { %1537 = vrot.lane.b32.xlu0 %v3205_v45, %s3807_s19  ;;  %1851 = vrot.lane.b32.xlu1 %v3219_v32, %s3928_s25 }
 0x45d   : > { %1559 = vrot.lane.b32.xlu0 %v3205_v45, %s3929_s14  ;;  %1365 = vrot.lane.b32.xlu1 %v3247_v16, %s3921_s22  ;;  %s3933_s22 = smov 79  }
 0x461   : > { %1579 = vrot.lane.b32.xlu0 %v3205_v45, %s3930_s21  ;;  %1387 = vrot.lane.b32.xlu1 %v3247_v16, %s3799_s11 }
 0x465   : > { %1601 = vrot.lane.b32.xlu0 %v3205_v45, %s3931_s18  ;;  %1407 = vrot.lane.b32.xlu1 %v3247_v16, %s3922_s17 }
 0x469   : > { %1621 = vrot.lane.b32.xlu0 %v3205_v45, %s3932_s0  ;;  %1429 = vrot.lane.b32.xlu1 %v3247_v16, %s3797_s27 }
 0x46d   : > { %1643 = vrot.lane.b32.xlu0 %v3205_v45, %s3798_s28  ;;  %1451 = vrot.lane.b32.xlu1 %v3247_v16, %s3923_s30 }
 0x471   : > { %1665 = vrot.lane.b32.xlu0 %v3205_v45, %s3795_s26  ;;  %1471 = vrot.lane.b32.xlu1 %v3247_v16, %s3924_s12 }
 0x475   : > { %1685 = vrot.lane.b32.xlu0 %v3205_v45, %s3933_s22  ;;  %1493 = vrot.lane.b32.xlu1 %v3247_v16, %s3925_s20 }
 0x479   : > { %1707 = vrot.lane.b32.xlu0 %v3205_v45, %s3934_s1  ;;  %1513 = vrot.lane.b32.xlu1 %v3247_v16, %s3927_s23 }
 0x47d   : > { %1771 = vrot.lane.b32.xlu0 %v3205_v45, %s3794_s29  ;;  %1535 = vrot.lane.b32.xlu1 %v3247_v16, %s3807_s19 }
 0x481   : > { %1749 = vrot.lane.b32.xlu0 %v3205_v45, %s3926_s16  ;;  %1557 = vrot.lane.b32.xlu1 %v3247_v16, %s3929_s14 }
 0x485   : > { %1833 = vrot.lane.b32.xlu0 %v3205_v45, %s3935_s2  ;;  %1577 = vrot.lane.b32.xlu1 %v3247_v16, %s3930_s21 }
 0x489   : > { %1385 = vrot.lane.b32.xlu0 %v3219_v32, %s3799_s11  ;;  %1599 = vrot.lane.b32.xlu1 %v3247_v16, %s3931_s18 }
 0x48d   : > { %1405 = vrot.lane.b32.xlu0 %v3219_v32, %s3922_s17  ;;  %1619 = vrot.lane.b32.xlu1 %v3247_v16, %s3932_s0 }
 0x491   : > { %1427 = vrot.lane.b32.xlu0 %v3219_v32, %s3797_s27  ;;  %1641 = vrot.lane.b32.xlu1 %v3247_v16, %s3798_s28 }
 0x495   : > { %1449 = vrot.lane.b32.xlu0 %v3219_v32, %s3923_s30  ;;  %1663 = vrot.lane.b32.xlu1 %v3247_v16, %s3795_s26 }
 0x499   : > { %1469 = vrot.lane.b32.xlu0 %v3219_v32, %s3924_s12  ;;  %1683 = vrot.lane.b32.xlu1 %v3247_v16, %s3933_s22 }
 0x49d   : > { %1491 = vrot.lane.b32.xlu0 %v3219_v32, %s3925_s20  ;;  %1705 = vrot.lane.b32.xlu1 %v3247_v16, %s3934_s1 }
 0x4a1   : > { %1511 = vrot.lane.b32.xlu0 %v3219_v32, %s3927_s23  ;;  %1769 = vrot.lane.b32.xlu1 %v3247_v16, %s3794_s29 }
 0x4a5   : > { %1533 = vrot.lane.b32.xlu0 %v3219_v32, %s3807_s19  ;;  %1747 = vrot.lane.b32.xlu1 %v3247_v16, %s3926_s16 }
 0x4a9   : > { %1555 = vrot.lane.b32.xlu0 %v3219_v32, %s3929_s14  ;;  %1831 = vrot.lane.b32.xlu1 %v3247_v16, %s3935_s2 }
 0x4ab   : > { %v3329_v7 = vpop.permute.xlu1 %1727  ;;  %v1368_v5 = vpop.permute.xlu0 %1367 }
 0x4ad   : > { %1575 = vrot.lane.b32.xlu0 %v3219_v32, %s3930_s21  ;;  %1855 = vrot.lane.b32.xlu1 %v3205_v45, %s3928_s25  ;;  %v1355_v45 = vmul.f32 %v2760_v12, %v1353_v24 }
 0x4af   : > { %v3335_v41 = vpop.permute.xlu1 %1791  ;;  %v1390_v14 = vpop.permute.xlu0 %1389 }
 0x4b0   : > { %3936 = vst [vmem:[#allocation28_spill] sm:$0xff] %v3335_v41 }
 0x4b1   : > { %1597 = vrot.lane.b32.xlu0 %v3219_v32, %s3931_s18 }
 0x4b3   : > { %v3339_v29 = vpop.permute.xlu1 %1813  ;;  %v1410_v43 = vpop.permute.xlu0 %1409 }
 0x4b4   : > { %3937 = vst [vmem:[#allocation21_spill] sm:$0xff] %v3339_v29 }
 0x4b5   : > { %1617 = vrot.lane.b32.xlu0 %v3219_v32, %s3932_s0  ;;  %s3944_s0 = smov 77  }
 0x4b7   : > { %v1432_v54 = vpop.permute.xlu0 %1431  ;;  %v1364_v37 = vpop.permute.xlu1 %1363 }
 0x4b9   : > { %1639 = vrot.lane.b32.xlu0 %v3219_v32, %s3798_s28 }
 0x4bb   : > { %v1454_v28 = vpop.permute.xlu0 %1453  ;;  %v3345_v48 = vpop.permute.xlu1 %1723 }
 0x4bc   : > { %3938 = vst [vmem:[#allocation17_spill] sm:$0xff] %v3345_v48 }
 0x4bd   : > { %1661 = vrot.lane.b32.xlu0 %v3219_v32, %s3795_s26 }
 0x4bf   : > { %v1474_v2 = vpop.permute.xlu0 %1473  ;;  %v3349_v58 = vpop.permute.xlu1 %1787 }
 0x4c0   : > { %3939 = vst [vmem:[#allocation23_spill] sm:$0xff] %v3349_v58 }
 0x4c1   : > { %1681 = vrot.lane.b32.xlu0 %v3219_v32, %s3933_s22 }
 0x4c3   : > { %v1496_v30 = vpop.permute.xlu0 %1495  ;;  %v3353_v56 = vpop.permute.xlu1 %1745 }
 0x4c5   : > { %1703 = vrot.lane.b32.xlu0 %v3219_v32, %s3934_s1  ;;  %s3945_s1 = smov 63  }
 0x4c7   : > { %v1516_v35 = vpop.permute.xlu0 %1515  ;;  %v3357_v0 = vpop.permute.xlu1 %1809 }
 0x4c8   : > { %3940 = vst [vmem:[#allocation6_spill] sm:$0xff] %v3357_v0 }
 0x4c9   : > { %1767 = vrot.lane.b32.xlu0 %v3219_v32, %s3794_s29 }
 0x4cb   : > { %v1538_v50 = vpop.permute.xlu0 %1537  ;;  %v3361_v46 = vpop.permute.xlu1 %1851 }
 0x4cc   : > { %3941 = vst [vmem:[#allocation25_spill] sm:$0xff] %v3361_v46 }
 0x4cd   : > { %1829 = vrot.lane.b32.xlu0 %v3219_v32, %s3935_s2 }
 0x4cf   : > { %v1560_v23 = vpop.permute.xlu0 %1559  ;;  %v1366_v34 = vpop.permute.xlu1 %1365 }
 0x4d0   : > { %v1369_v53 = vsel %vm3942_vm3, %v1364_v37, %v1366_v34  ;;  %v1370_v61 = vsel %vm3943_vm15, %v1366_v34, %v1368_v5  ;;  %vm3949_vm3 = vcmask 785408   ;;  %vm3951_vm15 = vcmask 777216  }
 0x4d1   : > { %v1374_v8 = vmul.f32 %v1370_v61, %v3135_v19  ;;  %1725 = vrot.lane.b32.xlu0 %v3247_v16, %s3944_s0 }
 0x4d3   : > { %v1376_v26 = vmul.f32 %v2773_v57, %v1374_v8  ;;  %v1580_v18 = vpop.permute.xlu0 %1579  ;;  %v3373_v52 = vpop.permute.xlu1 %1387 }
 0x4d4   : > { %v1392_v1 = vsel %vm624_vm14, %v3373_v52, %v1390_v14 }
 0x4d5   : > { %v1378_v11 = vadd.f32 %v1376_v26, %v1355_v45  ;;  %v1396_v37 = vmul.f32 %v1392_v1, %v3145_v3  ;;  %1789 = vrot.lane.b32.xlu0 %v3247_v16, %s3945_s1 }
 0x4d7   : > { %v1398_v5 = vadd.f32 %v1396_v37, %v1378_v11  ;;  %v3381_v34 = vpop.permute.xlu0 %1601  ;;  %v3383_v61 = vpop.permute.xlu1 %1407 }
 0x4d8   : > { %v1412_v8 = vsel %vm645_vm6, %v3383_v61, %v1410_v43  ;;  %v1875_v43 = vld [vmem:[%s3653_s9] sm:$0xf] }
 0x4d9   : > { %v1416_v42 = vmul.f32 %v1412_v8, %v3165_v4  ;;  %1811 = vrot.lane.b32.xlu0 %v3247_v16, %s3802_s24 }
 0x4db   : > { %v1418_v14 = vmul.f32 %v3886_v38, %v1416_v42  ;;  %v3391_v24 = vpop.permute.xlu0 %1621  ;;  %v3393_v1 = vpop.permute.xlu1 %1429 }
 0x4dc   : > { %v1434_v11 = vsel %vm668_vm9, %v3393_v1, %v1432_v54 }
 0x4dd   : > { %v1420_v26 = vadd.f32 %v1418_v14, %v1398_v5  ;;  %v1438_v45 = vmul.f32 %v1434_v11, %v3167_v15  ;;  %1853 = vrot.lane.b32.xlu0 %v3247_v16, %s3928_s25 }
 0x4df   : > { %v1440_v37 = vmul.f32 %v3898_v9, %v1438_v45  ;;  %v3404_v42 = vpop.permute.xlu0 %1643  ;;  %v3406_v8 = vpop.permute.xlu1 %1451 }
 0x4e0   : > { %v1456_v46 = vsel %vm3946_vm4, %v3406_v8, %v1454_v28  ;;  %vm3957_vm4 = vmmov %vm3947_vm11 }
 0x4e1   : > { %v1442_v54 = vadd.f32 %v1440_v37, %v1420_v26  ;;  %1878 = vperm.xlu0 %2103, %v1875_v43   ;;  %v1460_v5 = vmul.f32 %v1456_v46, %v3169_v47 }
 0x4e3   : > { %v3411_v14 = vpop.permute.xlu0 %1665  ;;  %v3413_v16 = vpop.permute.xlu1 %1471  ;;  %v1462_v0 = vmul.f32 %v2760_v12, %v1460_v5 }
 0x4e4   : > { %v1476_v11 = vsel %vm3947_vm11, %v3413_v16, %v1474_v2  ;;  %vm3958_vm11 = vcmask 916480  }
 0x4e5   : > { %v1480_v45 = vmul.f32 %v1476_v11, %v3171_v6 }
 0x4e7   : > { %v1482_v51 = vmul.f32 %v2773_v57, %v1480_v45  ;;  %v3420_v29 = vpop.permute.xlu0 %1685  ;;  %v3422_v28 = vpop.permute.xlu1 %1493 }
 0x4e8   : > { %v1498_v46 = vsel %vm735_vm8, %v3422_v28, %v1496_v30 }
 0x4e9   : > { %v1484_v26 = vadd.f32 %v1482_v51, %v1462_v0  ;;  %v1502_v43 = vmul.f32 %v1498_v46, %v3173_v62 }
 0x4eb   : > { %v1504_v37 = vadd.f32 %v1502_v43, %v1484_v26  ;;  %v3427_v60 = vpop.permute.xlu0 %1707  ;;  %v3429_v2 = vpop.permute.xlu1 %1513 }
 0x4ec   : > { %v1518_v5 = vsel %vm3948_vm1, %v3429_v2, %v1516_v35 }
 0x4ed   : > { %v1522_v11 = vmul.f32 %v1518_v5, %v3175_v40  ;;  %v1373_v5 = vmul.f32 %v1369_v53, %v3135_v19 }
 0x4ef   : > { %v1524_v45 = vmul.f32 %v3886_v38, %v1522_v11  ;;  %v3435_v41 = vpop.permute.xlu0 %1771  ;;  %v3437_v58 = vpop.permute.xlu1 %1535 }
 0x4f0   : > { %v1540_v51 = vsel %vm779_vm12, %v3437_v58, %v1538_v50 }
 0x4f1   : > { %v1526_v30 = vadd.f32 %v1524_v45, %v1504_v37  ;;  %v1544_v0 = vmul.f32 %v1540_v51, %v3177_v10  ;;  %v1352_v37 = vmul.f32 %v3143_v17, %v3219_v32 }
 0x4f3   : > { %v1546_v46 = vmul.f32 %v3898_v9, %v1544_v0  ;;  %v3443_v26 = vpop.permute.xlu0 %1749  ;;  %v3445_v43 = vpop.permute.xlu1 %1557  ;;  %v3952_v0 = vld [vmem:[#allocation40_spill] sm:$0xff] }
 0x4f4   : > { %v1562_v35 = vsel %vm3949_vm3, %v3445_v43, %v1560_v23  ;;  %v1375_v48 = vmul.f32 %v3952_v0, %v1373_v5  ;;  %vm3959_vm3 = vmmov %vm3951_vm15 }
 0x4f5   : > { %v1548_v11 = vadd.f32 %v1546_v46, %v1526_v30  ;;  %v1566_v21 = vmul.f32 %v1562_v35, %v3179_v63  ;;  %v1354_v46 = vmul.f32 %v2757_v33, %v1352_v37 }
 0x4f7   : > { %v3451_v25 = vpop.permute.xlu0 %1833  ;;  %v3453_v50 = vpop.permute.xlu1 %1577  ;;  %v3457_v45 = vadd.f32 %v1548_v11, %v1442_v54  ;;  %v1568_v19 = vmul.f32 %v2760_v12, %v1566_v21 }
 0x4f8   : > { %v1582_v51 = vsel %vm3951_vm15, %v3453_v50, %v1580_v18  ;;  %v1377_v18 = vadd.f32 %v1375_v48, %v1354_v46 }
 0x4f9   : > { %3950 = vst [vmem:[#allocation31_spill] sm:$0xff] %v3457_v45  ;;  %v1586_v23 = vmul.f32 %v1582_v51, %v3181_v44 }
 0x4fb   : > { %v1588_v53 = vmul.f32 %v2773_v57, %v1586_v23  ;;  %v1386_v30 = vpop.permute.xlu0 %1385  ;;  %v3466_v35 = vpop.permute.xlu1 %1599 }
 0x4fc   : > { %v1391_v17 = vsel %vm624_vm14, %v1386_v30, %v3373_v52  ;;  %v1604_v32 = vsel %vm846_vm13, %v3466_v35, %v3381_v34  ;;  %vm3953_vm14 = vcmask 760832  }
 0x4fd   : > { %v1395_v54 = vmul.f32 %v1391_v17, %v3145_v3  ;;  %v1590_v5 = vadd.f32 %v1588_v53, %v1568_v19  ;;  %v1608_v21 = vmul.f32 %v1604_v32, %v3183_v55 }
 0x4ff   : > { %v1397_v11 = vadd.f32 %v1395_v54, %v1377_v18  ;;  %v1610_v51 = vadd.f32 %v1608_v21, %v1590_v5  ;;  %v1406_v23 = vpop.permute.xlu0 %1405  ;;  %v3475_v45 = vpop.permute.xlu1 %1619 }
 0x500   : > { %v1411_v37 = vsel %vm645_vm6, %v1406_v23, %v3383_v61  ;;  %v1624_v52 = vsel %vm3953_vm14, %v3475_v45, %v3391_v24  ;;  %vm3954_vm6 = vcmask 654336  }
 0x501   : > { %v1415_v34 = vmul.f32 %v1411_v37, %v3165_v4  ;;  %v1628_v48 = vmul.f32 %v1624_v52, %v3185_v36  ;;  %vm3961_vm14 = vmmov %vm3954_vm6 }
 0x503   : > { %v1417_v3 = vmul.f32 %v2777_v20, %v1415_v34  ;;  %v1630_v19 = vmul.f32 %v3886_v38, %v1628_v48  ;;  %v1428_v53 = vpop.permute.xlu0 %1427  ;;  %v3486_v30 = vpop.permute.xlu1 %1641 }
 0x504   : > { %v1433_v46 = vsel %vm668_vm9, %v1428_v53, %v3393_v1  ;;  %v1646_v61 = vsel %vm890_vm7, %v3486_v30, %v3404_v42  ;;  %vm3956_vm9 = vcmask 646144  }
 0x505   : > { %v1419_v17 = vadd.f32 %v1417_v3, %v1397_v11  ;;  %v1632_v24 = vadd.f32 %v1630_v19, %v1610_v51  ;;  %v1437_v4 = vmul.f32 %v1433_v46, %v3167_v15  ;;  %v1650_v32 = vmul.f32 %v1646_v61, %v3187_v49  ;;  %vm3960_vm15 = vmmov %vm3956_vm9 }
 0x507   : > { %v1439_v18 = vmul.f32 %v2785_v39, %v1437_v4  ;;  %v1652_v54 = vmul.f32 %v3898_v9, %v1650_v32  ;;  %v1450_v5 = vpop.permute.xlu0 %1449  ;;  %v1664_v21 = vpop.permute.xlu1 %1663 }
 0x508   : > { %v1668_v23 = vsel %vm3954_vm6, %v1664_v21, %v3411_v14  ;;  %vm3968_vm6 = vcmask 760832  }
 0x509   : > { %v3499_v1 = vadd.f32 %v1439_v18, %v1419_v17  ;;  %v3501_v37 = vadd.f32 %v1652_v54, %v1632_v24  ;;  %v1672_v42 = vmul.f32 %v1668_v23, %v3189_v22 }
 0x50b   : > { %3955 = vst [vmem:[#allocation10_spill] sm:$0xff] %v3499_v1  ;;  %v1470_v11 = vpop.permute.xlu0 %1469  ;;  %v1684_v51 = vpop.permute.xlu1 %1683  ;;  %v1674_v34 = vmul.f32 %v2760_v12, %v1672_v42 }
 0x50c   : > { %v1688_v15 = vsel %vm3956_vm9, %v1684_v51, %v3420_v29  ;;  %vm3970_vm9 = vcmask 515072  }
 0x50d   : > { %v1692_v52 = vmul.f32 %v1688_v15, %v3191_v27 }
 0x50f   : > { %v1694_v48 = vmul.f32 %v2773_v57, %v1692_v52  ;;  %v1492_v3 = vpop.permute.xlu0 %1491  ;;  %v1706_v19 = vpop.permute.xlu1 %1705 }
 0x510   : > { %v1710_v14 = vsel %vm957_vm0, %v1706_v19, %v3427_v60  ;;  %v1475_v60 = vsel %vm3957_vm4, %v1470_v11, %v3413_v16  ;;  %vm3972_vm4 = vmmov %vm3970_vm9 }
 0x511   : > { %v1696_v53 = vadd.f32 %v1694_v48, %v1674_v34  ;;  %v1714_v46 = vmul.f32 %v1710_v14, %v3193_v13  ;;  %v1455_v34 = vsel %vm3958_vm11, %v1450_v5, %v3406_v8  ;;  %v1479_v14 = vmul.f32 %v1475_v60, %v3171_v6  ;;  %v3967_v60 = vld [vmem:[#allocation16_spill] sm:$0xff] }
 0x513   : > { %v3512_v61 = vadd.f32 %v1714_v46, %v1696_v53  ;;  %v1512_v17 = vpop.permute.xlu0 %1511  ;;  %v1770_v15 = vpop.permute.xlu1 %1769  ;;  %v1459_v46 = vmul.f32 %v1455_v34, %v3169_v47  ;;  %v1481_v49 = vmul.f32 %v3952_v0, %v1479_v14  ;;  %v1497_v47 = vsel %vm735_vm8, %v1492_v3, %v3422_v28 }
 0x514   : > { %v1517_v1 = vsel %vm3948_vm1, %v1512_v17, %v3429_v2  ;;  %v1774_v39 = vsel %vm1024_vm2, %v1770_v15, %v3435_v41  ;;  %vm3962_vm8 = vcmask 785408  }
 0x515   : > { %v1521_v2 = vmul.f32 %v1517_v1, %v3175_v40  ;;  %v1778_v11 = vmul.f32 %v1774_v39, %v3195_v59 }
 0x517   : > { %v1534_v24 = vpop.permute.xlu0 %1533  ;;  %v1748_v48 = vpop.permute.xlu1 %1747 }
 0x518   : > { %v1752_v16 = vsel %vm1001_vm10, %v1748_v48, %v3443_v26  ;;  %v1461_v26 = vmul.f32 %v2757_v33, %v1459_v46 }
 0x51a   : > { %v3553_v1 = vadd.f32 %v1481_v49, %v1461_v26 }
 0x51b   : > { %v1556_v4 = vpop.permute.xlu0 %1555  ;;  %v3540_v41 = vpop.permute.xlu1 %1831 }
 0x51c   : > { %v1561_v28 = vsel %vm3962_vm8, %v1556_v4, %v3445_v43  ;;  %v1780_v43 = vmul.f32 %v2760_v12, %v1778_v11  ;;  %v3964_v4 = vld [vmem:[#allocation17_spill] sm:$0xff] }
 0x51f   : > { %v1576_v29 = vpop.permute.xlu0 %1575 }
 0x520   : > { %v1581_v8 = vsel %vm3959_vm3, %v1576_v29, %v3453_v50  ;;  %v1539_v50 = vsel %vm779_vm12, %v1534_v24, %v3437_v58  ;;  %v1756_v29 = vmul.f32 %v1752_v16, %v3139_v31  ;;  %v1836_v58 = vsel %vm1089_vm5, %v3540_v41, %v3451_v25 }
 0x521   : > { %v1585_v40 = vmul.f32 %v1581_v8, %v3181_v44  ;;  %v3563_v24 = vmul.f32 %v2777_v20, %v1521_v2  ;;  %v1543_v44 = vmul.f32 %v1539_v50, %v3177_v10  ;;  %v1840_v34 = vmul.f32 %v1836_v58, %v3967_v60  ;;  %v3969_v8 = vld [vmem:[#allocation23_spill] sm:$0xff] }
 0x523   : > { %v3514_v32 = vpop.permute.xlu0 %1597  ;;  %v1587_v12 = vmul.f32 %v3952_v0, %v1585_v40  ;;  %v1842_v50 = vmul.f32 %v3886_v38, %v1840_v34 }
 0x527   : > { %v1618_v18 = vpop.permute.xlu0 %1617 }
 0x52b   : > { %v3516_v54 = vpop.permute.xlu0 %1639 }
 0x52f   : > { %v1662_v23 = vpop.permute.xlu0 %1661 }
 0x530   : > { %v1667_v17 = vsel %vm3961_vm14, %v1662_v23, %v1664_v21  ;;  %v3556_v21 = vmul.f32 %v1497_v47, %v3173_v62  ;;  %v3966_v23 = vld [vmem:[#allocation33_spill] sm:$0xff]  ;;  %v3971_v47 = vld [vmem:[#allocation28_spill] sm:$0xff] }
 0x533   : > { %v1682_v42 = vpop.permute.xlu0 %1681 }
 0x534   : > { %v1687_v5 = vsel %vm3960_vm15, %v1682_v42, %v1684_v51  ;;  %v1751_v51 = vsel %vm1001_vm10, %v3353_v56, %v1748_v48  ;;  %v1671_v56 = vmul.f32 %v1667_v17, %v3189_v22  ;;  %vm3963_vm10 = vcmask 629760  }
 0x535   : > { %v1691_v39 = vmul.f32 %v1687_v5, %v3191_v27  ;;  %v1755_v62 = vmul.f32 %v1751_v51, %v3139_v31  ;;  %v1565_v27 = vmul.f32 %v1561_v28, %v3179_v63  ;;  %vm3965_vm12 = vmmov %vm3963_vm10  ;;  %v1758_v42 = vmul.f32 %v3898_v9, %v1756_v29 }
 0x536   : > { %v1673_v31 = vmul.f32 %v2757_v33, %v1671_v56 }
 0x537   : > { %v1704_v52 = vpop.permute.xlu0 %1703  ;;  %v1693_v10 = vmul.f32 %v3952_v0, %v1691_v39  ;;  %v1567_v11 = vmul.f32 %v2757_v33, %v1565_v27  ;;  %v1645_v39 = vsel %vm890_vm7, %v3516_v54, %v3486_v30  ;;  %v1856_v54 = vpop.permute.xlu1 %1855  ;;  %vm3981_vm7 = vcmask 490496  }
 0x538   : > { %v1709_v63 = vsel %vm957_vm0, %v1704_v52, %v1706_v19 }
 0x539   : > { %v1713_v26 = vmul.f32 %v1709_v63, %v3193_v13  ;;  %v1589_v40 = vadd.f32 %v1587_v12, %v1567_v11  ;;  %v3984_v63 = vld [vmem:[#allocation20_spill] sm:$0xff] }
 0x53b   : > { %v1768_v53 = vpop.permute.xlu0 %1767 }
 0x53c   : > { %v1773_v46 = vsel %vm1024_vm2, %v1768_v53, %v1770_v15  ;;  %v1603_v15 = vsel %vm846_vm13, %v3514_v32, %v3466_v35  ;;  %v1695_v53 = vadd.f32 %v1693_v10, %v1673_v31  ;;  %v3974_v32 = vld [vmem:[#allocation21_spill] sm:$0xff]  ;;  %vm3975_vm13 = vcmask 506880   ;;  %vm3982_vm2 = vmmov %vm3981_vm7  ;;  %v3983_v10 = vld [vmem:[#allocation31_spill] sm:$0xff] }
 0x53d   : > { %v1777_v51 = vmul.f32 %v1773_v46, %v3195_v59  ;;  %v1607_v13 = vmul.f32 %v1603_v15, %v3183_v55  ;;  %v3976_v59 = vld [vmem:[#allocation7_spill] sm:$0xff]  ;;  %vm3978_vm0 = vmmov %vm3975_vm13 }
 0x53f   : > { %v3534_v6 = vpop.permute.xlu0 %1829 }
 0x540   : > { %v1835_v55 = vsel %vm1089_vm5, %v3534_v6, %v3540_v41  ;;  %v3985_v6 = vld [vmem:[#allocation42_spill] sm:$0xff] }
 0x541   : > { %v1545_v41 = vmul.f32 %v3985_v6, %v1543_v44  ;;  %v1757_v46 = vmul.f32 %v3985_v6, %v1755_v62 }
 0x543   : > { %v1726_v3 = vpop.permute.xlu0 %1725 }
 0x544   : > { %v1730_v49 = vsel %vm3963_vm10, %v1726_v3, %v3329_v7  ;;  %v1729_v25 = vsel %vm3965_vm12, %v3964_v4, %v1726_v3  ;;  %v1623_v7 = vsel %vm3968_vm6, %v1618_v18, %v3475_v45  ;;  %v3973_v18 = vld [vmem:[#allocation19_spill] sm:$0xff]  ;;  %v1715_v3 = vadd.f32 %v1713_v26, %v1695_v53  ;;  %v3979_v4 = vld [vmem:[#allocation30_spill] sm:$0xff] }
 0x545   : > { %v1734_v22 = vmul.f32 %v1730_v49, %v3966_v23  ;;  %v1733_v16 = vmul.f32 %v1729_v25, %v3966_v23  ;;  %v1627_v52 = vmul.f32 %v1623_v7, %v3185_v36  ;;  %v3977_v49 = vld [vmem:[#allocation6_spill] sm:$0xff]  ;;  %v1649_v25 = vmul.f32 %v1645_v39, %v3979_v4 }
 0x546   : > { %v1779_v23 = vmul.f32 %v2757_v33, %v1777_v51  ;;  %v3986_v26 = vld [vmem:[#allocation10_spill] sm:$0xff] }
 0x547   : > { %v1736_v48 = vmul.f32 %v3886_v38, %v1734_v22  ;;  %v1790_v14 = vpop.permute.xlu0 %1789  ;;  %v1735_v35 = vmul.f32 %v2777_v20, %v1733_v16  ;;  %v1609_v16 = vadd.f32 %v1607_v13, %v1589_v40 }
 0x548   : > { %v1793_v5 = vsel %vm3970_vm9, %v3969_v8, %v1790_v14  ;;  %v1794_v2 = vsel %vm3972_vm4, %v1790_v14, %v3971_v47  ;;  %v1503_v14 = vadd.f32 %v3556_v21, %v3553_v1  ;;  %v1651_v8 = vmul.f32 %v3985_v6, %v1649_v25 }
 0x549   : > { %v1738_v45 = vadd.f32 %v1736_v48, %v3512_v61  ;;  %v1797_v17 = vmul.f32 %v1793_v5, %v3973_v18  ;;  %v1798_v19 = vmul.f32 %v1794_v2, %v3973_v18  ;;  %v1737_v22 = vadd.f32 %v1735_v35, %v1715_v3 }
 0x54a   : > { %v1839_v5 = vmul.f32 %v1835_v55, %v3967_v60  ;;  %v1525_v11 = vadd.f32 %v3563_v24, %v1503_v14  ;;  %v3987_v24 = vld [vmem:[#allocation22_spill] sm:$0xff] }
 0x54b   : > { %v1800_v29 = vmul.f32 %v2773_v57, %v1798_v19  ;;  %v1812_v61 = vpop.permute.xlu0 %1811  ;;  %v1760_v28 = vadd.f32 %v1758_v42, %v1738_v45  ;;  %v1799_v38 = vmul.f32 %v3952_v0, %v1797_v17  ;;  %v1629_v57 = vmul.f32 %v2777_v20, %v1627_v52  ;;  %v3980_v42 = vld [vmem:[#allocation25_spill] sm:$0xff] }
 0x54c   : > { %v1816_v36 = vsel %vm3975_vm13, %v1812_v61, %v3974_v32  ;;  %v1815_v27 = vsel %vm3978_vm0, %v3977_v49, %v1812_v61  ;;  %v1759_v17 = vadd.f32 %v1757_v46, %v1737_v22  ;;  %v1547_v1 = vadd.f32 %v1545_v41, %v1525_v11 }
 0x54d   : > { %v1802_v58 = vadd.f32 %v1800_v29, %v1780_v43  ;;  %v1820_v56 = vmul.f32 %v1816_v36, %v3976_v59  ;;  %v1870_v30 = vadd.f32 %v1760_v28, %v3501_v37  ;;  %v1801_v37 = vadd.f32 %v1799_v38, %v1779_v23  ;;  %v3988_v29 = vld [vmem:[#allocation29_spill] sm:$0xff] }
 0x54e   : > { %v1819_v31 = vmul.f32 %v1815_v27, %v3976_v59  ;;  %v1631_v45 = vadd.f32 %v1629_v57, %v1609_v16  ;;  %v1841_v44 = vmul.f32 %v2777_v20, %v1839_v5  ;;  %v1890_v51 = vrot.slane %v3987_v24, 4 }
 0x54f   : > { %v1822_v0 = vadd.f32 %v1820_v56, %v1802_v58  ;;  %v1854_v43 = vpop.permute.xlu0 %1853  ;;  %v1872_v7 = vadd.f32 %v1870_v30, %v3983_v10  ;;  %v1889_v61 = vrot.slane %v3988_v29, 4 }
 0x550   : > { %v1857_v34 = vsel %vm3981_vm7, %v3980_v42, %v1854_v43  ;;  %v1858_v12 = vsel %vm3982_vm2, %v1854_v43, %v1856_v54  ;;  %v1821_v18 = vadd.f32 %v1819_v31, %v1801_v37  ;;  %v1653_v21 = vadd.f32 %v1651_v8, %v1631_v45 }
 0x551   : > { %v1862_v48 = vmul.f32 %v1858_v12, %v3984_v63  ;;  %v1844_v33 = vadd.f32 %v1842_v50, %v1822_v0  ;;  %v1861_v47 = vmul.f32 %v1857_v34, %v3984_v63 }
 0x552   : > { %v1843_v52 = vadd.f32 %v1841_v44, %v1821_v18  ;;  %v1869_v60 = vadd.f32 %v1759_v17, %v1653_v21 }
 0x553   : > { %v1864_v2 = vmul.f32 %v3898_v9, %v1862_v48  ;;  %v1863_v62 = vmul.f32 %v3985_v6, %v1861_v47  ;;  %v1867_v9 = vadd.f32 %v1547_v1, %v3986_v26 }
 0x555   : > { %v1866_v19 = vadd.f32 %v1864_v2, %v1844_v33  ;;  %v1865_v53 = vadd.f32 %v1863_v62, %v1843_v52  ;;  %v1871_v50 = vadd.f32 %v1869_v60, %v1867_v9 }
 0x557   : > { %v1874_v15 = vadd.f32 %v1872_v7, %v1866_v19  ;;  %v1873_v28 = vadd.f32 %v1871_v50, %v1865_v53 }
 0x560   : > { %v1879_v40 = vpop.permute.xlu0 %1878 }
 0x561   : > { %v1881_v39 = vadd.f32 %v1879_v40, %v1873_v28  ;;  %v1882_v35 = vadd.f32 %v1879_v40, %v1874_v15 }
 0x563   : > { %v1893_v20 = vadd.f32 %v1889_v61, %v1881_v39  ;;  %v1894_v32 = vadd.f32 %v1890_v51, %v1882_v35 }
 0x565   : > { %v1897_v36 = vrot.slane %v1893_v20, 4  ;;  %v1898_v13 = vrot.slane %v1894_v32, 4 }
 0x567   : > { %1901 = vst [vmem:[%s3152_s15] sm:$0xf0] %v1897_v36  ;;  %1902 = vst [vmem:[%s3152_s15 + $0x8] sm:$0xf0] %v1898_v13 }
 0x568 PF: > { %s20_s13 = sadd.s32 1, %s2130_s13  }
 0x569   : > { %p17_p4 = scmp.ge.s32.totalorder %s20_s13, 4  }
 0x56b   :  { %19 = sbr.rel (!%p17_p4) target bundleno = 4 (0x4), region = 90 }

</bundles_post_ra>
